<compile_context>
chip_gen: v7x
topology: tpu7x:2x2x1
jax: 0.10.0
libtpu: 0.0.40
codegen_flags: <defaults>
</compile_context>

<pallas_src>
import functools
import math

import jax
import jax.numpy as jnp
from jax.experimental import pallas as pl
from jax.experimental.pallas import tpu as pltpu

NEG_BIG = -1e30


def _leaky_relu(x):
    # nn.LeakyReLU(negative_slope=0.2)
    return jnp.where(x > 0, x, 0.2 * x)


def _vpu_bf16_ok():
    """bf16 masked-max datapath on v6e/v7x; keep f32 on v5e (no bf16 VPU)."""
    try:
        kind = jax.devices()[0].device_kind.lower()
    except Exception:
        return True
    return not ("v5e" in kind or "v5 lite" in kind or "v5lite" in kind)


# ---------------------------------------------------------------------------
# Kernel 1: per-node transforms (one fused wide feat matmul).
# ---------------------------------------------------------------------------
def _node_kernel(feat_ref, wcat_ref, b01_ref, att_ref,
                 h0s_ref, zj_ref, rhs_ref):
    f32 = jnp.float32
    dh = b01_ref.shape[1]
    g = zj_ref.shape[1]

    feat = feat_ref[...]                                            # (TM, F)
    # fused: feat @ [w0 | w1 | wpg | wg_f | wg_m]  -> (TM, 2*dh + G + 2)
    prod = jnp.dot(feat, wcat_ref[...], preferred_element_type=f32)

    h0 = jnp.maximum(prod[:, 0:dh] + b01_ref[0:1, :], 0.0)          # ReLU order-0
    h1 = jnp.maximum(prod[:, dh:2 * dh] + b01_ref[1:2, :], 0.0)     # ReLU order-1
    zj = prod[:, 2 * dh:2 * dh + g]                                 # feat @ wpg
    gate_self = prod[:, 2 * dh + g:2 * dh + g + 1]                  # feat @ wg_f
    gm = prod[:, 2 * dh + g + 1:2 * dh + g + 2]                     # feat @ wg_m

    # attention scores as VPU multiply + lane reduce (keep 1-wide work off MXU)
    att = att_ref[...]                                              # (1, 2*dh)
    s_self = _leaky_relu(jnp.sum(h0 * att[:, 0:dh], axis=1, keepdims=True))
    s_neigh = _leaky_relu(jnp.sum(h1 * att[:, dh:2 * dh], axis=1, keepdims=True))

    # Lane-dense 128-wide f32 slab, single full-width store:
    # [h0 | s_self | gate_self | 0-pad]
    parts = [h0, s_self, gate_self]
    pad_w = h0s_ref.shape[1] - (dh + 2)
    if pad_w > 0:
        parts.append(jnp.zeros((h0.shape[0], pad_w), f32))
    h0s_ref[...] = jnp.concatenate(parts, axis=1)

    # zj in bf16 on chips with bf16 VPU (halves the masked-max VALU work).
    zj_ref[...] = zj.astype(zj_ref.dtype)

    # bf16 MXU RHS for kernel 2: [h1 | s_neigh*h1 | gm | 1]
    # (gm column folds the gate neighbor-mean reduce into the MXU matmul;
    #  the ones column gives a robust per-row neighbor flag: adj @ 1.)
    rhs_ref[...] = jnp.concatenate(
        [h1, s_neigh * h1, gm, jnp.ones_like(gm)], axis=1).astype(rhs_ref.dtype)


# ---------------------------------------------------------------------------
# Kernel 2: adjacency-consuming aggregation (row tiles x column tiles).
# ---------------------------------------------------------------------------
def _agg_kernel(adj_ref, h0s_ref, zj_ref, rhs_ref, wgz_ref,
                scale_ref, offset_ref, out_ref,
                acc_agg, acc_max, *, k_sub):
    f32 = jnp.float32
    c = pl.program_id(1)
    dh = out_ref.shape[1]
    tk = adj_ref.shape[1]

    @pl.when(c == 0)
    def _init():
        acc_agg[...] = jnp.zeros_like(acc_agg)
        acc_max[...] = jnp.full_like(acc_max, NEG_BIG)

    adj = adj_ref[...]                     # (TM, TK) bf16 straight from HBM

    # One fused bf16 MXU matmul per column block (f32 accumulation in VMEM):
    #   adj @ [h1 | s_neigh*h1 | gm | 1]
    acc_agg[...] += jnp.dot(adj, rhs_ref[...], preferred_element_type=f32)

    # Masked running max of neighbor gate projections zj.  Sublane-matched
    # chunks (16 bf16 / 8 f32), lane-replicated mask operand, register-carried
    # (TM, G) accumulator -> one VMEM read/write per column block.
    zall = zj_ref[...]                                    # (TK, G) zdtype
    neg = jnp.array(NEG_BIG, dtype=zall.dtype)
    mask = adj != 0.0                                     # (TM, TK) bool
    cur = acc_max[...]
    for t0 in range(0, tk, k_sub):
        m3 = mask[:, t0:t0 + k_sub][:, :, None]           # (TM, ks, 1)
        z3 = zall[t0:t0 + k_sub, :][None, :, :]           # (1, ks, G)
        cur = jnp.maximum(cur, jnp.max(jnp.where(m3, z3, neg), axis=1))
    acc_max[...] = cur

    @pl.when(c == pl.num_programs(1) - 1)
    def _finalize():
        agg = acc_agg[...]
        agg_h1 = agg[:, 0:dh]                             # adj @ h1
        agg_sh1 = agg[:, dh:2 * dh]                       # adj @ (s_neigh*h1)
        gate_nm = agg[:, 2 * dh:2 * dh + 1]               # adj @ (feat @ wg_m)
        deg = agg[:, 2 * dh + 1:2 * dh + 2]               # adj @ 1 (neighbor flag)

        run_max = acc_max[...].astype(f32)
        has_neigh = deg > 0.0                             # >=1 neighbor
        neigh_zj = jnp.where(has_neigh, run_max, 0.0)     # isolated -> 0

        h0 = h0s_ref[:, 0:dh]
        s_self = h0s_ref[:, dh:dh + 1]
        gate_self = h0s_ref[:, dh + 1:dh + 2]

        # gate (GaAN eq. 3)
        gate = (gate_self
                + jnp.sum(neigh_zj * wgz_ref[...], axis=1, keepdims=True)
                + gate_nm)

        # att_adj @ h1 factored as s_self*(adj@h1) + adj@(s_neigh*h1)
        h1_agg = (s_self * agg_h1 + agg_sh1) * gate

        # per-order row "batch norm" (bias == 'norm')
        def row_norm(h, sc, off):
            mean = jnp.mean(h, axis=1, keepdims=True)
            var = jnp.mean((h - mean) ** 2, axis=1, keepdims=True) + 1e-9
            return (h - mean) * sc * jax.lax.rsqrt(var) + off

        # aggr == 'mean': sum of the two hops
        out_ref[...] = (row_norm(h0, scale_ref[0:1, :], offset_ref[0:1, :])
                        + row_norm(h1_agg, scale_ref[1:2, :], offset_ref[1:2, :]))


# ---------------------------------------------------------------------------
# Wrapper
# ---------------------------------------------------------------------------
def gaan_forward(adj, feat, params, *, tm=256, tk=256):
    """GaAN forward (order=1, mulhead=1, aggr='mean', bias='norm', act='relu')."""
    wpg, wg, w0, b0, w1, b1, att, scale, offset = params
    n, f = feat.shape
    g = wpg.shape[1]
    dh = w0.shape[1]

    zdtype = jnp.bfloat16 if _vpu_bf16_ok() else jnp.float32
    k_sub = 16 if zdtype == jnp.bfloat16 else 8

    # Clamp tiles for small graphs; pad node count to lcm(tm, tk).  Padded
    # nodes are isolated (zero adj rows/cols, zero features) and sliced off.
    n128 = ((n + 127) // 128) * 128
    tm = min(tm, n128)
    tk = min(tk, n128)
    tile = tm * tk // math.gcd(tm, tk)
    n_pad = ((n + tile - 1) // tile) * tile

    adj = adj.astype(jnp.float32)
    feat = feat.astype(jnp.float32)
    if n_pad != n:
        adj = jnp.pad(adj, ((0, n_pad - n), (0, n_pad - n)))
        feat = jnp.pad(feat, ((0, n_pad - n), (0, 0)))
    # Ship the adjacency as bf16 from HBM (halves the dominant stream).
    adj = adj.astype(jnp.bfloat16)

    # Fold all feat-side weights into one wide matmul operand.
    wg_f = wg[0:f]                                   # (F, 1)
    wg_z = wg[f:f + g]                               # (G, 1)
    wg_m = wg[f + g:]                                # (F, 1)
    wcat = jnp.concatenate([w0, w1, wpg, wg_f, wg_m], axis=1)   # (F, 2*dh+G+2)
    b01 = jnp.concatenate([b0, b1], axis=0)                     # (2, dh)
    wgz_row = wg_z.T                                            # (1, G)

    hs_w = ((dh + 2 + 127) // 128) * 128             # lane-dense kernel-1 slab
    rhs_w = 2 * dh + 2                               # [h1 | s_neigh*h1 | gm | 1]

    grid_rows = n_pad // tm
    grid_cols = n_pad // tk

    # ---------------- kernel 1: per-node transforms ----------------
    h0s, zj, rhs = pl.pallas_call(
        _node_kernel,
        grid=(grid_rows,),
        in_specs=[
            pl.BlockSpec((tm, f), lambda i: (i, 0)),
            pl.BlockSpec(wcat.shape, lambda i: (0, 0)),
            pl.BlockSpec(b01.shape, lambda i: (0, 0)),
            pl.BlockSpec(att.shape, lambda i: (0, 0)),
        ],
        out_specs=[
            pl.BlockSpec((tm, hs_w), lambda i: (i, 0)),
            pl.BlockSpec((tm, g), lambda i: (i, 0)),
            pl.BlockSpec((tm, rhs_w), lambda i: (i, 0)),
        ],
        out_shape=[
            jax.ShapeDtypeStruct((n_pad, hs_w), jnp.float32),   # [h0|s_self|gate_self|pad]
            jax.ShapeDtypeStruct((n_pad, g), zdtype),           # zj
            jax.ShapeDtypeStruct((n_pad, rhs_w), jnp.bfloat16), # [h1|s_neigh*h1|gm|1]
        ],
        compiler_params=pltpu.CompilerParams(
            dimension_semantics=("parallel",)),
    )(feat, wcat, b01, att)

    # ---------------- kernel 2: adjacency aggregation ----------------
    zbytes = 2 if zdtype == jnp.bfloat16 else 4
    working_set = (
        2 * tm * tk * 2                        # adj block (bf16, double buffered)
        + 2 * tk * rhs_w * 2                   # rhs block (bf16)
        + 2 * tk * g * zbytes                  # zj block
        + 2 * tm * hs_w * 4                    # h0s block
        + 2 * tm * dh * 4                      # out block
        + tm * rhs_w * 4 + tm * g * zbytes     # accumulators
        + 4 * tm * k_sub * g * zbytes)         # in-flight masked-max chunks
    # Cap well below the smallest per-core VMEM (64 MiB on v7x).
    vmem_limit = int(min(32 * 1024 * 1024, max(16 * 1024 * 1024, 2 * working_set)))

    flops = int(2 * n_pad * n_pad * rhs_w + 2 * n_pad * n_pad * g)
    bytes_accessed = int(
        adj.size * 2
        + grid_rows * (rhs.size * 2 + zj.size * zbytes)
        + h0s.size * 4 + n_pad * dh * 4)

    out = pl.pallas_call(
        functools.partial(_agg_kernel, k_sub=k_sub),
        grid=(grid_rows, grid_cols),
        in_specs=[
            pl.BlockSpec((tm, tk), lambda i, c: (i, c)),          # adj (bf16)
            pl.BlockSpec((tm, hs_w), lambda i, c: (i, 0)),        # [h0|s_self|gate_self]
            pl.BlockSpec((tk, g), lambda i, c: (c, 0)),           # zj
            pl.BlockSpec((tk, rhs_w), lambda i, c: (c, 0)),       # MXU RHS (bf16)
            pl.BlockSpec((1, g), lambda i, c: (0, 0)),            # wg_z^T
            pl.BlockSpec((2, dh), lambda i, c: (0, 0)),           # scale
            pl.BlockSpec((2, dh), lambda i, c: (0, 0)),           # offset
        ],
        out_specs=pl.BlockSpec((tm, dh), lambda i, c: (i, 0)),
        out_shape=jax.ShapeDtypeStruct((n_pad, dh), jnp.float32),
        scratch_shapes=[
            pltpu.VMEM((tm, rhs_w), jnp.float32),                 # fused matmul acc
            pltpu.VMEM((tm, g), zdtype),                          # running masked max
        ],
        compiler_params=pltpu.CompilerParams(
            dimension_semantics=("parallel", "arbitrary"),
            vmem_limit_bytes=vmem_limit),
        cost_estimate=pl.CostEstimate(flops=flops, transcendentals=0,
                                      bytes_accessed=bytes_accessed),
    )(adj, h0s, zj, rhs, wgz_row, scale, offset)

    return out[:n]


# ---------------------------------------------------------------------------
# Pure-JAX f32 reference mirroring the PyTorch forward (dense adjacency).
# ---------------------------------------------------------------------------
def gaan_reference(adj, feat, params):
    wpg, wg, w0, b0, w1, b1, att, scale, offset = params
    dh = w0.shape[1]
    zj = feat @ wpg
    mask = adj != 0.0
    has = jnp.any(mask, axis=1, keepdims=True)
    neigh_zj = jnp.where(
        has, jnp.max(jnp.where(mask[:, :, None], zj[None, :, :], -1e30), axis=1), 0.0)
    neigh_mean = adj @ feat
    gate = jnp.concatenate([feat, neigh_zj, neigh_mean], axis=1) @ wg
    h0 = jax.nn.relu(feat @ w0 + b0)
    h1 = jax.nn.relu(feat @ w1 + b1)
    s_self = jax.nn.leaky_relu((att[:, :dh] @ h0.T), 0.2)[0]
    s_neigh = jax.nn.leaky_relu((att[:, dh:] @ h1.T), 0.2)[0]
    att_adj = (s_self[:, None] + s_neigh[None, :]) * adj
    h1a = (att_adj @ h1) * gate[:, 0:1]

    def row_norm(h, sc, off):
        mean = h.mean(axis=1, keepdims=True)
        var = ((h - mean) ** 2).mean(axis=1, keepdims=True) + 1e-9
        return (h - mean) * sc * jax.lax.rsqrt(var) + off

    return row_norm(h0, scale[0:1], offset[0:1]) + row_norm(h1a, scale[1:2], offset[1:2])


if __name__ == "__main__":
    # Small shapes consistent with the module (mulhead=1, order=1).
    N, dim_in, dim_out, dim_gate = 256, 32, 64, 64
    dh = dim_out  # dim_out // mulhead

    key = jax.random.PRNGKey(0)
    keys = jax.random.split(key, 10)

    def xavier(k, shape):
        bound = (6.0 / (shape[0] + shape[1])) ** 0.5
        return jax.random.uniform(k, shape, jnp.float32, -bound, bound)

    # random sparse-ish adjacency, row-normalized, with one isolated node
    m = (jax.random.uniform(keys[0], (N, N)) < 0.15).astype(jnp.float32)
    m = m.at[5, :].set(0.0)                               # node with no neighbors
    deg = m.sum(axis=1, keepdims=True)
    adj = m / jnp.maximum(deg, 1.0)

    feat = jax.random.normal(keys[1], (N, dim_in), jnp.float32)

    # TODO(synk): dropout (p=0.0) is an identity at inference and is omitted.
    wpg = xavier(keys[2], (dim_in, dim_gate))             # weight_pool_gate
    wg = xavier(keys[3], (2 * dim_in + dim_gate, 1))      # weight_gate (mulhead=1)
    w0 = xavier(keys[4], (dim_in, dh))                    # f_lin, order 0
    b0 = jax.random.uniform(keys[5], (1, dh), jnp.float32, -0.1, 0.1)
    w1 = xavier(keys[6], (dim_in, dh))                    # f_lin, order 1
    b1 = jax.random.uniform(keys[7], (1, dh), jnp.float32, -0.1, 0.1)
    att = xavier(keys[8], (1, 2 * dh))                    # attention param (order 1)
    scale = jnp.ones((2, dim_out), jnp.float32)           # _scale (torch init: ones)
    offset = jnp.zeros((2, dim_out), jnp.float32)         # _offset (torch init: zeros)

    params = (wpg, wg, w0, b0, w1, b1, att, scale, offset)

    # Small tiles here so the demo exercises both grid axes (2x2 grid,
    # accumulator init/step/finalize).  Defaults (tm=256, tk=256) are the
    # performance configuration for real graph sizes.
    out = jax.block_until_ready(gaan_forward(adj, feat, params, tm=128, tk=128))
    ref = gaan_reference(adj, feat, params)

    assert out.shape == (N, dim_out)
    assert bool(jnp.all(jnp.isfinite(out)))
    max_err = float(jnp.max(jnp.abs(out - ref)))
    assert bool(jnp.allclose(out, ref, rtol=5e-2, atol=5e-2)), max_err
    print("KERNEL_OK")
</pallas_src>

<mosaic_0001>
module attributes {stable_mosaic.version = 11 : i64} {
  func.func @_node_kernel(%arg0: i32, %arg1: memref<128x32xf32, #tpu.memory_space<vmem>>, %arg2: memref<32x194xf32, #tpu.memory_space<vmem>>, %arg3: memref<2x64xf32, #tpu.memory_space<vmem>>, %arg4: memref<1x128xf32, #tpu.memory_space<vmem>>, %arg5: memref<128x128xf32, #tpu.memory_space<vmem>>, %arg6: memref<128x64xbf16, #tpu.memory_space<vmem>>, %arg7: memref<128x130xbf16, #tpu.memory_space<vmem>>) attributes {dimension_semantics = [#tpu.dimension_semantics<parallel>], iteration_bounds = array<i64: 2>, scalar_prefetch = 0 : i64, scratch_operands = 0 : i64, tpu.core_type = #tpu.core_type<tc>, window_params = [{transform_indices = @transform_0, window_bounds = array<i64: 128, 32>}, {pipeline_mode = #tpu.pipeline_mode<synchronous>, transform_indices = @transform_1, window_bounds = array<i64: 32, 194>}, {pipeline_mode = #tpu.pipeline_mode<synchronous>, transform_indices = @transform_2, window_bounds = array<i64: 2, 64>}, {pipeline_mode = #tpu.pipeline_mode<synchronous>, transform_indices = @transform_3, window_bounds = array<i64: 1, 128>}, {transform_indices = @transform_4, window_bounds = array<i64: 128, 128>}, {transform_indices = @transform_5, window_bounds = array<i64: 128, 64>}, {transform_indices = @transform_6, window_bounds = array<i64: 128, 130>}]} {
    %c0 = arith.constant 0 : index
    %c0_0 = arith.constant 0 : index
    %0 = vector.load %arg1[%c0, %c0_0] : memref<128x32xf32, #tpu.memory_space<vmem>>, vector<128x32xf32>
    %c0_1 = arith.constant 0 : index
    %c0_2 = arith.constant 0 : index
    %1 = vector.load %arg2[%c0_1, %c0_2] : memref<32x194xf32, #tpu.memory_space<vmem>>, vector<32x194xf32>
    %cst = arith.constant dense<0.000000e+00> : vector<128x194xf32>
    %2 = tpu.matmul %0, %1, %cst {dimension_numbers = #tpu.dot_dimension_numbers<[1], [0], [0], [1], [0, 0, 1, 1], [], []>} : vector<128x32xf32>, vector<32x194xf32>, vector<128x194xf32> -> vector<128x194xf32>
    %3 = vector.extract_strided_slice %2 {offsets = [0, 0], sizes = [128, 64], strides = [1, 1]} : vector<128x194xf32> to vector<128x64xf32>
    %c0_3 = arith.constant 0 : index
    %c0_4 = arith.constant 0 : index
    %4 = vector.load %arg3[%c0_3, %c0_4] : memref<2x64xf32, #tpu.memory_space<vmem>>, vector<1x64xf32>
    %5 = vector.broadcast %4 : vector<1x64xf32> to vector<128x64xf32>
    %6 = arith.addf %3, %5 : vector<128x64xf32>
    %cst_5 = arith.constant 0.000000e+00 : f32
    %7 = vector.broadcast %cst_5 : f32 to vector<128x64xf32>
    %8 = arith.maximumf %6, %7 : vector<128x64xf32>
    %9 = vector.extract_strided_slice %2 {offsets = [0, 64], sizes = [128, 64], strides = [1, 1]} : vector<128x194xf32> to vector<128x64xf32>
    %c1 = arith.constant 1 : index
    %c0_6 = arith.constant 0 : index
    %10 = vector.load %arg3[%c1, %c0_6] : memref<2x64xf32, #tpu.memory_space<vmem>>, vector<1x64xf32>
    %11 = vector.broadcast %10 : vector<1x64xf32> to vector<128x64xf32>
    %12 = arith.addf %9, %11 : vector<128x64xf32>
    %cst_7 = arith.constant 0.000000e+00 : f32
    %13 = vector.broadcast %cst_7 : f32 to vector<128x64xf32>
    %14 = arith.maximumf %12, %13 : vector<128x64xf32>
    %15 = vector.extract_strided_slice %2 {offsets = [0, 128], sizes = [128, 64], strides = [1, 1]} : vector<128x194xf32> to vector<128x64xf32>
    %16 = vector.extract_strided_slice %2 {offsets = [0, 192], sizes = [128, 1], strides = [1, 1]} : vector<128x194xf32> to vector<128x1xf32>
    %17 = vector.extract_strided_slice %2 {offsets = [0, 193], sizes = [128, 1], strides = [1, 1]} : vector<128x194xf32> to vector<128x1xf32>
    %c0_8 = arith.constant 0 : index
    %c0_9 = arith.constant 0 : index
    %18 = vector.load %arg4[%c0_8, %c0_9] : memref<1x128xf32, #tpu.memory_space<vmem>>, vector<1x128xf32>
    %19 = vector.extract_strided_slice %18 {offsets = [0, 0], sizes = [1, 64], strides = [1, 1]} : vector<1x128xf32> to vector<1x64xf32>
    %20 = vector.broadcast %19 : vector<1x64xf32> to vector<128x64xf32>
    %21 = arith.mulf %8, %20 : vector<128x64xf32>
    %cst_10 = arith.constant dense<0.000000e+00> : vector<128xf32>
    %22 = vector.multi_reduction <add>, %21, %cst_10 [1] : vector<128x64xf32> to vector<128xf32>
    %23 = vector.shape_cast %22 : vector<128xf32> to vector<128x1xf32>
    %cst_11 = arith.constant 0.000000e+00 : f32
    %24 = vector.broadcast %cst_11 : f32 to vector<128x1xf32>
    %25 = arith.cmpf ogt, %23, %24 : vector<128x1xf32>
    %cst_12 = arith.constant 2.000000e-01 : f32
    %26 = vector.broadcast %cst_12 : f32 to vector<128x1xf32>
    %27 = arith.mulf %26, %23 : vector<128x1xf32>
    %28 = arith.select %25, %23, %27 : vector<128x1xi1>, vector<128x1xf32>
    %29 = vector.extract_strided_slice %18 {offsets = [0, 64], sizes = [1, 64], strides = [1, 1]} : vector<1x128xf32> to vector<1x64xf32>
    %30 = vector.broadcast %29 : vector<1x64xf32> to vector<128x64xf32>
    %31 = arith.mulf %14, %30 : vector<128x64xf32>
    %cst_13 = arith.constant dense<0.000000e+00> : vector<128xf32>
    %32 = vector.multi_reduction <add>, %31, %cst_13 [1] : vector<128x64xf32> to vector<128xf32>
    %33 = vector.shape_cast %32 : vector<128xf32> to vector<128x1xf32>
    %cst_14 = arith.constant 0.000000e+00 : f32
    %34 = vector.broadcast %cst_14 : f32 to vector<128x1xf32>
    %35 = arith.cmpf ogt, %33, %34 : vector<128x1xf32>
    %cst_15 = arith.constant 2.000000e-01 : f32
    %36 = vector.broadcast %cst_15 : f32 to vector<128x1xf32>
    %37 = arith.mulf %36, %33 : vector<128x1xf32>
    %38 = arith.select %35, %33, %37 : vector<128x1xi1>, vector<128x1xf32>
    %cst_16 = arith.constant 0.000000e+00 : f32
    %39 = vector.broadcast %cst_16 : f32 to vector<128x62xf32>
    %40 = tpu.concatenate %8, %28, %16, %39 in 1 : vector<128x64xf32>, vector<128x1xf32>, vector<128x1xf32>, vector<128x62xf32> -> vector<128x128xf32>
    %c0_17 = arith.constant 0 : index
    %c0_18 = arith.constant 0 : index
    %41 = vector.load %arg5[%c0_17, %c0_18] : memref<128x128xf32, #tpu.memory_space<vmem>>, vector<128x128xf32>
    tpu.vector_store %arg5[%c0_17, %c0_18], %40 {strides = array<i32>} : memref<128x128xf32, #tpu.memory_space<vmem>>, vector<128x128xf32>,
    %42 = arith.truncf %15 : vector<128x64xf32> to vector<128x64xbf16>
    %c0_19 = arith.constant 0 : index
    %c0_20 = arith.constant 0 : index
    %43 = vector.load %arg6[%c0_19, %c0_20] : memref<128x64xbf16, #tpu.memory_space<vmem>>, vector<128x64xbf16>
    tpu.vector_store %arg6[%c0_19, %c0_20], %42 {strides = array<i32>} : memref<128x64xbf16, #tpu.memory_space<vmem>>, vector<128x64xbf16>,
    %44 = vector.broadcast %38 : vector<128x1xf32> to vector<128x64xf32>
    %45 = arith.mulf %44, %14 : vector<128x64xf32>
    %cst_21 = arith.constant 1.000000e+00 : f32
    %46 = vector.broadcast %cst_21 : f32 to vector<128x1xf32>
    %47 = tpu.concatenate %14, %45, %17, %46 in 1 : vector<128x64xf32>, vector<128x64xf32>, vector<128x1xf32>, vector<128x1xf32> -> vector<128x130xf32>
    %48 = arith.truncf %47 : vector<128x130xf32> to vector<128x130xbf16>
    %c0_22 = arith.constant 0 : index
    %c0_23 = arith.constant 0 : index
    %49 = vector.load %arg7[%c0_22, %c0_23] : memref<128x130xbf16, #tpu.memory_space<vmem>>, vector<128x130xbf16>
    tpu.vector_store %arg7[%c0_22, %c0_23], %48 {strides = array<i32>} : memref<128x130xbf16, #tpu.memory_space<vmem>>, vector<128x130xbf16>,
    return
  }
  func.func @transform_0(%arg0: i32) -> (i32, i32) {
    %c0_i32 = arith.constant 0 : i32
    %c0_i32_0 = arith.constant 0 : i32
    return %arg0, %c0_i32 : i32, i32
  }
  func.func @transform_1(%arg0: i32) -> (i32, i32) {
    %c0_i32 = arith.constant 0 : i32
    %c0_i32_0 = arith.constant 0 : i32
    %c0_i32_1 = arith.constant 0 : i32
    return %c0_i32, %c0_i32_0 : i32, i32
  }
  func.func @transform_2(%arg0: i32) -> (i32, i32) {
    %c0_i32 = arith.constant 0 : i32
    %c0_i32_0 = arith.constant 0 : i32
    %c0_i32_1 = arith.constant 0 : i32
    return %c0_i32, %c0_i32_0 : i32, i32
  }
  func.func @transform_3(%arg0: i32) -> (i32, i32) {
    %c0_i32 = arith.constant 0 : i32
    %c0_i32_0 = arith.constant 0 : i32
    %c0_i32_1 = arith.constant 0 : i32
    return %c0_i32, %c0_i32_0 : i32, i32
  }
  func.func @transform_4(%arg0: i32) -> (i32, i32) {
    %c0_i32 = arith.constant 0 : i32
    %c0_i32_0 = arith.constant 0 : i32
    return %arg0, %c0_i32 : i32, i32
  }
  func.func @transform_5(%arg0: i32) -> (i32, i32) {
    %c0_i32 = arith.constant 0 : i32
    %c0_i32_0 = arith.constant 0 : i32
    return %arg0, %c0_i32 : i32, i32
  }
  func.func @transform_6(%arg0: i32) -> (i32, i32) {
    %c0_i32 = arith.constant 0 : i32
    %c0_i32_0 = arith.constant 0 : i32
    return %arg0, %c0_i32 : i32, i32
  }
}

</mosaic_0001>

<bundles_post_ra>
// kernel: tpu_custom_call.1
= control target key start
LH: loop header
LB: loop body
LE: loop exit
PB: predicated region body
PF: predicated region fallthrough
CT: control target
= control target key end

     0   :  { %12 = vsyncpa [#allocation3], 0  ;;  %s2862_s0 = inlined_call_operand.vmem [shape: f32[256,32], index: 0, kind: input, shape index: {}]   ;;  %s2863_s1 = inlined_call_operand.vmem [shape: f32[32,194], index: 1, kind: input, shape index: {}]   ;;  %s2864_s2 = inlined_call_operand.vmem [shape: f32[2,64], index: 2, kind: input, shape index: {}]   ;;  %s2865_s3 = inlined_call_operand.vmem [shape: f32[1,128], index: 3, kind: input, shape index: {}]   ;;  %s2866_s4 = inlined_call_operand.hbm [shape: f32[256,128], index: 4, kind: output, shape index: {0}]   ;;  %s2867_s5 = inlined_call_operand.vmem [shape: bf16[256,64], index: 5, kind: output, shape index: {1}]   ;;  %s2868_s6 = inlined_call_operand.vmem [shape: bf16[256,130], index: 6, kind: output, shape index: {2}]  }
   0x1   :  { %14 = vsyncpa [#allocation3 + $0x1], 0  ;;  %s1868_s21 = smov 0   ;;  %s1870_s22 = smov 0  }
   0x2   :  { %s1872_s23 = smov 0   ;;  %s1874_s24 = smov 0  }
   0x3 LB: > { %s1889_s25 = sadd.s32 4294967295, %s1824_s24   ;;  %s1523_s26 = sadd.s32 4294967294, %s1824_s24   ;;  %s1824_s24 = sphi %s1874_s24, %s2909_s24   ;;  %s1820_s23 = sphi %s1872_s23, %s2908_s23   ;;  %s1816_s22 = sphi %s1870_s22, %s2907_s22   ;;  %s1812_s21 = sphi %s1868_s21, %s2906_s21  }
   0x4   : > { %s1893_s27 = sadd.s32 1, %s1824_s24   ;;  %s116_s28 = sadd.s32 1, %s1820_s23 }
   0x5   : > { %s113_s29 = ssub.s32 %s1824_s24, %s1893_s27  ;;  %p126_p0 = scmp.ne.s32.totalorder %s1820_s23, %s1816_s22 }
   0x6   : > { %p114_p1 = scmp.eq.s32.totalorder %s113_s29, 0  ;;  %p127_p2 = scmp.eq.s32.totalorder %s1889_s25, 1 }
   0x7   : > { %p132_p3 = scmp.ne.s32.totalorder %s1816_s22, %s1812_s21  ;;  %p133_p4 = scmp.eq.s32.totalorder %s1523_s26, 1 }
   0x8   : > { %s1904_s30 = scalar_select %p114_p1, %s1820_s23, %s116_s28  }
   0x9   : > { %p1906_p5 = por %p127_p2, %p126_p0  ;;  %p1910_p6 = por %p133_p4, %p132_p3 }
   0xa   : > { %p1526_p7 = scmp.ge.s32.totalorder %s1824_s24, 1  ;;  %p221_p8 = scmp.lt.s32.totalorder %s1824_s24, 3 }
   0xc   : > { %p222_p9 = pnand %p1526_p7, %p221_p8 }
   0xe   : > { %225 = sbr.rel (%p222_p9) target bundleno = 922 (0x39a), region = 36 }
  0x15   : > { %v299_v0 = vld [vmem:[%s2863_s1 + $0x8] sm:$0xff]  ;;  %v301_v1 = vld [vmem:[%s2863_s1 + $0x18] sm:$0xff]  ;;  %v298_v2 = vld [vmem:[%s2863_s1] sm:$0xff]  ;;  %s1528_s15 = sshll.u32 %s1889_s25, 4  ;;  %v1826_v7 = vmov 0.0   ;;  %s1827_s18 = smov 64  }
  0x16   : > { %v1625_v3 = vpack.c.bf16 %v301_v1, %v299_v0  ;;  %v300_v4 = vld [vmem:[%s2863_s1 + $0x10] sm:$0xff]  ;;  %v303_v5 = vld [vmem:[%s2863_s1 + $0x28] sm:$0xff]  ;;  %v305_v6 = vld [vmem:[%s2863_s1 + $0x38] sm:$0xff]  ;;  %419 = vmatprep.mubr.f32.mxu0 %v1826_v7  ;;  %467 = vmatprep.mubr.f32.mxu1 %v1826_v7  ;;  %p263_p10 = scmp.lt.s32.totalorder %s1528_s15, 31  ;;  %vm306_vm0 = vcmask 261120   ;;  %vm1084_vm1 = vcmask 519168  }
  0x17   : > { %v1627_v8 = vpack.c.bf16 %v300_v4, %v298_v2  ;;  %v1629_v9 = vpack.c.bf16 %v305_v6, %v303_v5  ;;  %v302_v10 = vld [vmem:[%s2863_s1 + $0x20] sm:$0xff]  ;;  %v304_v11 = vld [vmem:[%s2863_s1 + $0x30] sm:$0xff]  ;;  %s1828_s29 = smov 1   ;;  %s1829_s14 = smov 63   ;;  %vm617_vm2 = vcmask 523264   ;;  %vm970_vm4 = vcmask 531456  }
  0x18   : > { %1626 = vmatprep.subr.bf16.mxu0 %v1625_v3  ;;  %1633 = vmatprep.subr.bf16.mxu1 %v1625_v3  ;;  %s2911_s15 = smov (!%p263_p10, %s1528_s15), 31  ;;  %v1552_v12 = vld [vmem:[%s2864_s2 + $0x1] ss:$0 sm:$0xff]  ;;  %v1631_v13 = vpack.c.bf16 %v304_v11, %v302_v10  ;;  %v2022_v38 = vld [vmem:[%s2864_s2] ss:$0 sm:$0xff]  ;;  %s244_s16 = sand.u32 1, %s1816_s22  }
  0x19   : > { %1628 = vmatpush1.bf16.msra.mxu0 %v1627_v8  ;;  %1635 = vmatpush1.bf16.msra.mxu1 %v1627_v8  ;;  %s1529_s13 = sshll.u32 %s2911_s15, 3  ;;  %s1531_s19 = sshll.u32 %s2911_s15, 2  ;;  %v2045_v46 = vld [vmem:[%s2865_s3] ss:$0 sm:$0xff]  ;;  %vm987_vm5 = vcmask 539648  }
  0x1a   : > { %1630 = vmatprep.subr.bf16.mxu0 %v1629_v9  ;;  %1634 = vmatprep.subr.bf16.mxu1 %v1629_v9  ;;  %s1954_s17 = scalar_lea.vmem %s2862_s0, %s1529_s13  ;;  %s2015_s28 = scalar_lea.vmem %s2867_s5, %s1531_s19 }
  0x1b   : > { %559 = vrot.lane.b32.xlu0 %v1552_v12, %s1827_s18  ;;  %v282_v14 = vld [vmem:[%s1954_s17] sm:$0xff]  ;;  %v283_v16 = vld [vmem:[%s1954_s17 + $0x8] sm:$0xff]  ;;  %v284_v18 = vld [vmem:[%s1954_s17 + $0x10] sm:$0xff]  ;;  %s2629_s26 = scalar_lea.vmem %s2868_s6, %s1529_s13  ;;  %s1624_s15 = sshll.u32 %s1889_s25, 11 }
  0x1c   : > { %v290_v15 = vld [vmem:[%s1954_s17 + $0x40] sm:$0xff]  ;;  %v291_v17 = vld [vmem:[%s1954_s17 + $0x48] sm:$0xff]  ;;  %v292_v19 = vld [vmem:[%s1954_s17 + $0x50] sm:$0xff]  ;;  %s2727_s9 = scalar_lea.hbm %s2866_s4, %s1624_s15  ;;  %s2740_s25 = scalar_lea.sflag [#allocation3], %s244_s16 }
  0x1d   : > { %1632 = vmatpush1.bf16.msra.mxu0 %v1631_v13  ;;  %1636 = vmatpush1.bf16.msra.mxu1 %v1631_v13  ;;  %v285_v20 = vld [vmem:[%s1954_s17 + $0x18] sm:$0xff]  ;;  %v286_v22 = vld [vmem:[%s1954_s17 + $0x20] sm:$0xff]  ;;  %v287_v24 = vld [vmem:[%s1954_s17 + $0x28] sm:$0xff]  ;;  %s1830_s11 = smov [#allocation2]  }
  0x1e   : > { %v293_v21 = vld [vmem:[%s1954_s17 + $0x58] sm:$0xff]  ;;  %v294_v23 = vld [vmem:[%s1954_s17 + $0x60] sm:$0xff]  ;;  %v295_v25 = vld [vmem:[%s1954_s17 + $0x68] sm:$0xff]  ;;  %s1766_s12 = sshll.u32 %s1830_s11, 4  ;;  %s1767_s12 = int_to_ptr.vmem [resolvable:$false] %s1766_s12 }
  0x1f   : > { %v288_v26 = vld [vmem:[%s1954_s17 + $0x30] sm:$0xff]  ;;  %v289_v28 = vld [vmem:[%s1954_s17 + $0x38] sm:$0xff] }
  0x20   : > { %1535 = vmatmul.mubr.msk.f32.vlgmr.msra.gmra.mrb[0].mxu0 %vm306_vm0, %v282_v14  ;;  %1543 = vmatmul.mubr.msk.f32.vlgmr.msra.gmra.mrb[0].mxu1 %vm306_vm0, %v290_v15  ;;  %v296_v27 = vld [vmem:[%s1954_s17 + $0x70] sm:$0xff]  ;;  %v297_v29 = vld [vmem:[%s1954_s17 + $0x78] sm:$0xff]  ;;  %s1527_s17 = sshll.u32 %s244_s16, 7 }
  0x21   : > { %425 = vmatprep.mubr.f32.mxu0 %v1826_v7  ;;  %473 = vmatprep.mubr.f32.mxu1 %v1826_v7  ;;  %s2356_s19 = scalar_lea.vmem [#allocation2], %s1527_s17 }
  0x22   : > { %s1402_s13 = sshll.u32 %s2356_s19, 4  ;;  %s2729_s13 = int_to_ptr.vmem [resolvable:$true] %s1402_s13 }
  0x23   : > { %s1762_s10 = scalar_lea.vmem %s2729_s13, 2048  ;;  %p1769_p0 = scmp.lt.s32.totalorder %s2729_s13, %s1767_s12 }
  0x24   : > { %1536 = vmatmul.mubr.msk.f32.gmra.mrb[2].mxu0 %vm306_vm0, %v283_v16  ;;  %1544 = vmatmul.mubr.msk.f32.gmra.mrb[2].mxu1 %vm306_vm0, %v291_v17  ;;  %p1763_p11 = scmp.ne.s32.totalorder %s2729_s13, %s1762_s10 }
  0x25   : > { %431 = vmatprep.mubr.f32.mxu0 %v1826_v7  ;;  %479 = vmatprep.mubr.f32.mxu1 %v1826_v7 }
  0x26   : > { %p1764_p12 = pnand %p1763_p11, %p1906_p5 }
  0x28   : > { %1537 = vmatmul.mubr.msk.f32.gmra.mrb[4].mxu0 %vm306_vm0, %v284_v18  ;;  %1545 = vmatmul.mubr.msk.f32.gmra.mrb[4].mxu1 %vm306_vm0, %v292_v19  ;;  %p1765_p13 = pneg %p1764_p12 }
  0x29   : > { %437 = vmatprep.mubr.f32.mxu0 %v1826_v7  ;;  %485 = vmatprep.mubr.f32.mxu1 %v1826_v7 }
  0x2c   : > { %1538 = vmatmul.mubr.msk.f32.gmra.mrb[6].mxu0 %vm306_vm0, %v285_v20  ;;  %1546 = vmatmul.mubr.msk.f32.gmra.mrb[6].mxu1 %vm306_vm0, %v293_v21 }
  0x2d   : > { %443 = vmatprep.mubr.f32.mxu0 %v1826_v7  ;;  %491 = vmatprep.mubr.f32.mxu1 %v1826_v7 }
  0x30   : > { %1539 = vmatmul.mubr.msk.f32.gmra.mrb[8].mxu0 %vm306_vm0, %v286_v22  ;;  %1547 = vmatmul.mubr.msk.f32.gmra.mrb[8].mxu1 %vm306_vm0, %v294_v23 }
  0x31   : > { %449 = vmatprep.mubr.f32.mxu0 %v1826_v7  ;;  %497 = vmatprep.mubr.f32.mxu1 %v1826_v7 }
  0x34   : > { %1540 = vmatmul.mubr.msk.f32.gmra.mrb[10].mxu0 %vm306_vm0, %v287_v24  ;;  %1548 = vmatmul.mubr.msk.f32.gmra.mrb[10].mxu1 %vm306_vm0, %v295_v25 }
  0x35   : > { %455 = vmatprep.mubr.f32.mxu0 %v1826_v7  ;;  %503 = vmatprep.mubr.f32.mxu1 %v1826_v7 }
  0x38   : > { %1541 = vmatmul.mubr.msk.f32.gmra.mrb[12].mxu0 %vm306_vm0, %v288_v26  ;;  %1549 = vmatmul.mubr.msk.f32.gmra.mrb[12].mxu1 %vm306_vm0, %v296_v27 }
  0x39   : > { %461 = vmatprep.mubr.f32.mxu0 %v1826_v7  ;;  %509 = vmatprep.mubr.f32.mxu1 %v1826_v7 }
  0x3c   : > { %1542 = vmatmul.mubr.msk.f32.gmra.mrb[14].mxu0 %vm306_vm0, %v289_v28  ;;  %1550 = vmatmul.mubr.msk.f32.gmra.mrb[14].mxu1 %vm306_vm0, %v297_v29 }
  0x8d   : > { %v2003_v30 = vpop.permute.xlu0 %559 }
  0xf3   : > { %v2006_v31 = vpop.f32.mrb[0].mxu0  ;;  %v2008_v32 = vpop.f32.mrb[0].mxu1 }
  0xf4   : > { %v562_v33 = vadd.f32 %v2003_v30, %v2006_v31  ;;  %v423_v34 = vpop.f32.mrb[1].mxu0  ;;  %v471_v35 = vpop.f32.mrb[1].mxu1  ;;  %v570_v54 = vadd.f32 %v2003_v30, %v2008_v32 }
  0xf5   : > { %v1592_v36 = vpack.c.bf16 %v423_v34, %v423_v34  ;;  %v1600_v37 = vpack.c.bf16 %v471_v35, %v471_v35  ;;  %922 = vrot.lane.b32.xlu1 %v471_v35, %s1828_s29  ;;  %906 = vrot.lane.b32.xlu0 %v423_v34, %s1828_s29 }
  0xf6   : > { %v2024_v39 = vmax.f32 %v562_v33, 0.0  ;;  %v2087_v63 = vmax.f32 %v570_v54, 0.0  ;;  %v2216_v54 = vadd.f32 %v2022_v38, %v2008_v32 }
  0xf7   : > { %1085 = vst.msk [vmem:[%s2015_s28] sm:$0xf] %vm1084_vm1, %v1592_v36  ;;  %1093 = vst.msk [vmem:[%s2015_s28 + $0x20] sm:$0xf] %vm1084_vm1, %v1600_v37  ;;  %v2030_v40 = vpop.f32.mrb[2].mxu0  ;;  %v2032_v41 = vpop.f32.mrb[2].mxu1 }
  0xf8   : > { %v2036_v42 = vadd.f32 %v2022_v38, %v2030_v40  ;;  %v2040_v43 = vadd.f32 %v2022_v38, %v2032_v41  ;;  %v429_v44 = vpop.f32.mrb[3].mxu0  ;;  %v477_v45 = vpop.f32.mrb[3].mxu1  ;;  %v714_v52 = vmul.f32 %v2045_v46, %v2024_v39  ;;  %v722_v12 = vmul.f32 %v2045_v46, %v2087_v63 }
  0xf9   : > { %v1682_v47 = vpack.i.bf16 %v429_v44, %v423_v34  ;;  %v1593_v48 = vpack.c.bf16 %v429_v44, %v429_v44  ;;  %v1687_v49 = vpack.i.bf16 %v477_v45, %v471_v35  ;;  %v1601_v50 = vpack.c.bf16 %v477_v45, %v477_v45  ;;  %924 = vrot.lane.b32.xlu0 %v477_v45, %s1828_s29 }
  0xfa   : > { %908 = vrot.lane.b32.xlu1 %v429_v44, %s1828_s29  ;;  %v2191_v44 = vadd.f32 %v2022_v38, %v2006_v31  ;;  %v563_v32 = vadd.f32 %v2003_v30, %v2030_v40 }
  0xfb   : > { %1086 = vst.msk [vmem:[%s2015_s28 + $0x4] sm:$0xf] %vm1084_vm1, %v1593_v48  ;;  %1094 = vst.msk [vmem:[%s2015_s28 + $0x24] sm:$0xf] %vm1084_vm1, %v1601_v50  ;;  %v2053_v51 = vpop.f32.mrb[4].mxu1  ;;  %v2057_v53 = vpop.f32.mrb[4].mxu0 }
  0xfc   : > { %v2063_v55 = vadd.f32 %v2022_v38, %v2053_v51  ;;  %v2067_v56 = vadd.f32 %v2022_v38, %v2057_v53  ;;  %v2069_v57 = vpop.f32.mrb[5].mxu0  ;;  %v2071_v58 = vpop.f32.mrb[5].mxu1  ;;  %v537_v50 = vmax.f32 %v2191_v44, 0.0 }
  0xfd   : > { %746 = vrot.lane.b32.xlu0 %v714_v52, %s1827_s18  ;;  %v1594_v59 = vpack.c.bf16 %v2069_v57, %v2069_v57  ;;  %v1602_v60 = vpack.c.bf16 %v2071_v58, %v2071_v58 }
  0xfe   : > { %1683 = vrot.lane.b32.xlu1 %v1682_v47, %s1829_s14  ;;  %v601_v31 = vmul.f32 %v2045_v46, %v537_v50 }
  0xff   : > { %1087 = vst.msk [vmem:[%s2015_s28 + $0x8] sm:$0xf] %vm1084_vm1, %v1594_v59  ;;  %1095 = vst.msk [vmem:[%s2015_s28 + $0x28] sm:$0xf] %vm1084_vm1, %v1602_v60  ;;  %v2083_v61 = vpop.f32.mrb[6].mxu0  ;;  %v2085_v62 = vpop.f32.mrb[6].mxu1 }
 0x100   : > { %v2091_v0 = vadd.f32 %v2022_v38, %v2083_v61  ;;  %v2095_v1 = vadd.f32 %v2022_v38, %v2085_v62  ;;  %v2097_v2 = vpop.f32.mrb[7].mxu0  ;;  %v2099_v3 = vpop.f32.mrb[7].mxu1  ;;  %v618_v52 = vsel %vm617_vm2, %v601_v31, 0.0  ;;  %v545_v59 = vmax.f32 %v2216_v54, 0.0 }
 0x101   : > { %v1702_v4 = vpack.i.bf16 %v2097_v2, %v2069_v57  ;;  %v1595_v5 = vpack.c.bf16 %v2097_v2, %v2097_v2  ;;  %v1707_v6 = vpack.i.bf16 %v2099_v3, %v2071_v58  ;;  %v1603_v7 = vpack.c.bf16 %v2099_v3, %v2099_v3 }
 0x102   : > { %1688 = vrot.lane.b32.xlu1 %v1687_v49, %s1829_s14  ;;  %v609_v60 = vmul.f32 %v2045_v46, %v545_v59  ;;  %v2871_v31 = vmax.f32 %v2040_v43, 0.0 }
 0x103   : > { %1088 = vst.msk [vmem:[%s2015_s28 + $0xc] sm:$0xf] %vm1084_vm1, %v1595_v5  ;;  %1096 = vst.msk [vmem:[%s2015_s28 + $0x2c] sm:$0xf] %vm1084_vm1, %v1603_v7  ;;  %v2114_v8 = vpop.f32.mrb[8].mxu0  ;;  %v2116_v9 = vpop.f32.mrb[8].mxu1  ;;  %v571_v7 = vadd.f32 %v2003_v30, %v2032_v41 }
 0x104   : > { %v2120_v10 = vadd.f32 %v2022_v38, %v2114_v8  ;;  %v2124_v11 = vadd.f32 %v2022_v38, %v2116_v9  ;;  %v2128_v13 = vpop.f32.mrb[9].mxu0  ;;  %v2130_v14 = vpop.f32.mrb[9].mxu1  ;;  %v642_v5 = vsel %vm617_vm2, %v609_v60, 0.0  ;;  %v564_v60 = vadd.f32 %v2003_v30, %v2057_v53 }
 0x105   : > { %v1596_v15 = vpack.c.bf16 %v2128_v13, %v2128_v13  ;;  %v1604_v16 = vpack.c.bf16 %v2130_v14, %v2130_v14  ;;  %v573_v53 = vadd.f32 %v2003_v30, %v2085_v62 }
 0x106   : > { %762 = vrot.lane.b32.xlu1 %v722_v12, %s1827_s18  ;;  %v2225_v12 = vmax.f32 %v571_v7, 0.0 }
 0x107   : > { %1089 = vst.msk [vmem:[%s2015_s28 + $0x10] sm:$0xf] %vm1084_vm1, %v1596_v15  ;;  %1097 = vst.msk [vmem:[%s2015_s28 + $0x30] sm:$0xf] %vm1084_vm1, %v1604_v16  ;;  %v2141_v17 = vpop.f32.mrb[10].mxu0  ;;  %v2143_v18 = vpop.f32.mrb[10].mxu1 }
 0x108   : > { %v2147_v19 = vadd.f32 %v2022_v38, %v2141_v17  ;;  %v2151_v20 = vadd.f32 %v2022_v38, %v2143_v18  ;;  %v2153_v21 = vpop.f32.mrb[11].mxu0  ;;  %v2155_v22 = vpop.f32.mrb[11].mxu1  ;;  %v723_v15 = vmul.f32 %v2045_v46, %v2225_v12  ;;  %v1697_v40 = vpack.i.bf16 %v2225_v12, %v2087_v63 }
 0x109   : > { %v1597_v24 = vpack.c.bf16 %v2153_v21, %v2153_v21  ;;  %v1605_v26 = vpack.c.bf16 %v2155_v22, %v2155_v22 }
 0x10b   : > { %1090 = vst.msk [vmem:[%s2015_s28 + $0x14] sm:$0xf] %vm1084_vm1, %v1597_v24  ;;  %1098 = vst.msk [vmem:[%s2015_s28 + $0x34] sm:$0xf] %vm1084_vm1, %v1605_v26  ;;  %v2169_v27 = vpop.f32.mrb[12].mxu0  ;;  %v2171_v28 = vpop.f32.mrb[12].mxu1 }
 0x10c   : > { %v2175_v29 = vadd.f32 %v2022_v38, %v2169_v27  ;;  %v2179_v33 = vadd.f32 %v2022_v38, %v2171_v28  ;;  %v2181_v34 = vpop.f32.mrb[13].mxu0  ;;  %v2183_v35 = vpop.f32.mrb[13].mxu1 }
 0x10d   : > { %v1598_v36 = vpack.c.bf16 %v2181_v34, %v2181_v34  ;;  %v1606_v37 = vpack.c.bf16 %v2183_v35, %v2183_v35 }
 0x10f   : > { %1091 = vst.msk [vmem:[%s2015_s28 + $0x18] sm:$0xf] %vm1084_vm1, %v1598_v36  ;;  %1099 = vst.msk [vmem:[%s2015_s28 + $0x38] sm:$0xf] %vm1084_vm1, %v1606_v37  ;;  %v2197_v45 = vpop.f32.mrb[14].mxu0  ;;  %v2199_v47 = vpop.f32.mrb[14].mxu1 }
 0x110   : > { %v2203_v48 = vadd.f32 %v2022_v38, %v2197_v45  ;;  %v2207_v49 = vadd.f32 %v2022_v38, %v2199_v47  ;;  %v2232_v38 = vmax.f32 %v563_v32, 0.0  ;;  %v2256_v16 = vpop.f32.mrb[15].mxu0  ;;  %v2874_v37 = vmax.f32 %v2036_v42, 0.0 }
 0x111   : > { %v1737_v24 = vpack.i.bf16 %v2256_v16, %v2181_v34  ;;  %v572_v32 = vadd.f32 %v2003_v30, %v2053_v51 }
 0x112   : > { %v1692_v41 = vpack.i.bf16 %v2232_v38, %v2024_v39 }
 0x11c   : > { %619 = vadd.xlane.f32.xlu0 %v618_v52  ;;  %v602_v52 = vmul.f32 %v2045_v46, %v2874_v37 }
 0x11e   : > { %v621_v7 = vsel %vm617_vm2, %v602_v52, 0.0 }
 0x12a   : > { %643 = vadd.xlane.f32.xlu1 %v642_v5  ;;  %v565_v5 = vadd.f32 %v2003_v30, %v2083_v61  ;;  %v2302_v61 = vmax.f32 %v572_v32, 0.0 }
 0x12c   : > { %v724_v52 = vmul.f32 %v2045_v46, %v2302_v61 }
 0x132   : > { %764 = vrot.lane.b32.xlu0 %v723_v15, %s1827_s18  ;;  %v610_v15 = vmul.f32 %v2045_v46, %v2871_v31 }
 0x136   : > { %912 = vrot.lane.b32.xlu0 %v2097_v2, %s1828_s29  ;;  %v1599_v2 = vpack.c.bf16 %v2256_v16, %v2256_v16 }
 0x138   : > { %1092 = vst.msk [vmem:[%s2015_s28 + $0x1c] sm:$0xf] %vm1084_vm1, %v1599_v2  ;;  %v645_v2 = vsel %vm617_vm2, %v610_v15, 0.0 }
 0x13a   : > { %928 = vrot.lane.b32.xlu0 %v2099_v3, %s1828_s29  ;;  %v2267_v3 = vpop.f32.mrb[15].mxu1 }
 0x13b   : > { %1693 = vrot.lane.b32.xlu1 %v1692_v41, %s1827_s18  ;;  %v2295_v41 = vmax.f32 %v564_v60, 0.0 }
 0x13e   : > { %1703 = vrot.lane.b32.xlu0 %v1702_v4, %s1829_s14  ;;  %v715_v4 = vmul.f32 %v2045_v46, %v2232_v38 }
 0x13f   : > { %1698 = vrot.lane.b32.xlu1 %v1697_v40, %s1827_s18  ;;  %v2297_v40 = vmax.f32 %v565_v5, 0.0 }
 0x141   : > { %v717_v62 = vmul.f32 %v2045_v46, %v2297_v40 }
 0x142   : > { %1708 = vrot.lane.b32.xlu0 %v1707_v6, %s1829_s14  ;;  %v547_v6 = vmax.f32 %v2063_v55, 0.0  ;;  %v2886_v55 = vpack.i.bf16 %v2153_v21, %v2128_v13 }
 0x143   : > { %910 = vrot.lane.b32.xlu1 %v2069_v57, %s1828_s29 }
 0x144   : > { %v611_v26 = vmul.f32 %v2045_v46, %v547_v6 }
 0x146   : > { %v648_v36 = vsel %vm617_vm2, %v611_v26, 0.0 }
 0x147   : > { %926 = vrot.lane.b32.xlu1 %v2071_v58, %s1828_s29  ;;  %v1607_v58 = vpack.c.bf16 %v2267_v3, %v2267_v3 }
 0x149   : > { %1100 = vst.msk [vmem:[%s2015_s28 + $0x3c] sm:$0xf] %vm1084_vm1, %v1607_v58  ;;  %v1712_v58 = vpack.i.bf16 %v2297_v40, %v2295_v41  ;;  %vm1358_vm1 = vcmask 1043456  }
 0x14b   : > { %748 = vrot.lane.b32.xlu1 %v715_v4, %s1827_s18  ;;  %v2304_v4 = vmax.f32 %v573_v53, 0.0  ;;  %v2870_v53 = vmax.f32 %v2067_v56, 0.0 }
 0x14d   : > { %2885 = vst [vmem:[#allocation5_spill] sm:$0xff] %v2304_v4  ;;  %v1717_v51 = vpack.i.bf16 %v2304_v4, %v2302_v61  ;;  %v725_v26 = vmul.f32 %v2045_v46, %v2304_v4 }
 0x161   : > { %649 = vadd.xlane.f32.xlu0 %v648_v36  ;;  %v716_v36 = vmul.f32 %v2045_v46, %v2295_v41 }
 0x167   : > { %v907_v60 = vpop.permute.xlu0 %906  ;;  %v923_v5 = vpop.permute.xlu1 %922 }
 0x16b   : > { %v2329_v15 = vpop.permute.xlu0 %924 }
 0x16c   : > { %v2331_v32 = vpop.permute.xlu1 %908 }
 0x16f   : > { %622 = vadd.xlane.f32.xlu1 %v621_v7  ;;  %v2869_v7 = vmax.f32 %v2124_v11, 0.0 }
 0x173   : > { %646 = vadd.xlane.f32.xlu1 %v645_v2  ;;  %v613_v2 = vmul.f32 %v2045_v46, %v2869_v7 }
 0x177   : > { %1713 = vrot.lane.b32.xlu0 %v1712_v58, %s1827_s18  ;;  %v2337_v58 = vpop.permute.xlu0 %746 }
 0x17b   : > { %1718 = vrot.lane.b32.xlu0 %v1717_v51, %s1827_s18  ;;  %v2339_v51 = vpop.permute.xlu1 %1683 }
 0x17f   : > { %752 = vrot.lane.b32.xlu0 %v717_v62, %s1827_s18  ;;  %v654_v62 = vsel %vm617_vm2, %v613_v2, 0.0  ;;  %v2349_v7 = vpop.permute.xlu1 %1688 }
 0x183   : > { %768 = vrot.lane.b32.xlu0 %v725_v26, %s1827_s18  ;;  %v603_v26 = vmul.f32 %v2045_v46, %v2870_v53 }
 0x184   : > { %750 = vrot.lane.b32.xlu1 %v716_v36, %s1827_s18 }
 0x185   : > { %v624_v57 = vsel %vm617_vm2, %v603_v26, 0.0 }
 0x187   : > { %916 = vrot.lane.b32.xlu0 %v2153_v21, %s1828_s29 }
 0x188   : > { %766 = vrot.lane.b32.xlu1 %v724_v52, %s1827_s18 }
 0x18b   : > { %932 = vrot.lane.b32.xlu0 %v2155_v22, %s1828_s29 }
 0x1a9   : > { %v620_v36 = vpop.xlane.xlu0 %619 }
 0x1aa   : > { %vm666_vm3 = vcmp.gt.f32.partialorder %v620_v36, 0.0  ;;  %v682_v52 = vmul.f32 0.2, %v620_v36  ;;  %655 = vadd.xlane.f32.xlu0 %v654_v62  ;;  %v2359_v62 = vpop.permute.xlu1 %762 }
 0x1ac   : > { %v698_v25 = vsel %vm666_vm3, %v620_v36, %v682_v52  ;;  %625 = vadd.xlane.f32.xlu1 %v624_v57  ;;  %v567_v57 = vadd.f32 %v2003_v30, %v2141_v17  ;;  %vm1359_vm3 = vcmask 15364  }
 0x1ad   : > { %v954_v2 = vsel %vm617_vm2, %v537_v50, %v698_v25  ;;  %v575_v25 = vadd.f32 %v2003_v30, %v2143_v18  ;;  %v2393_v54 = vpop.permute.xlu0 %764 }
 0x1ae   : > { %v971_v53 = vsel %vm970_vm4, %v954_v2, %v907_v60  ;;  %v2363_v44 = vmax.f32 %v567_v57, 0.0  ;;  %v2873_v57 = vmax.f32 %v2095_v1, 0.0 }
 0x1af   : > { %v988_v31 = vsel %vm987_vm5, %v971_v53, 0.0  ;;  %v2374_v17 = vmax.f32 %v575_v25, 0.0  ;;  %v2875_v25 = vmax.f32 %v2179_v33, 0.0 }
 0x1b0   : > { %1004 = vst [vmem:[%s2356_s19] sm:$0xff] %v988_v31  ;;  %v719_v52 = vmul.f32 %v2045_v46, %v2363_v44 }
 0x1b1   : > { %v727_v18 = vmul.f32 %v2045_v46, %v2374_v17 }
 0x1b7   : > { %v644_v26 = vpop.xlane.xlu1 %643 }
 0x1b8   : > { %vm674_vm6 = vcmp.gt.f32.partialorder %v644_v26, 0.0  ;;  %v690_v36 = vmul.f32 0.2, %v644_v26 }
 0x1ba   : > { %v706_v50 = vsel %vm674_vm6, %v644_v26, %v690_v36  ;;  %vm1245_vm6 = vcmask 7168  }
 0x1bb   : > { %v962_v60 = vsel %vm617_vm2, %v545_v59, %v706_v50  ;;  %v2395_v59 = vpop.permute.xlu0 %912  ;;  %v2401_v26 = vpop.permute.xlu1 %1693  ;;  %v612_v50 = vmul.f32 %v2045_v46, %v2873_v57 }
 0x1bc   : > { %v979_v31 = vsel %vm970_vm4, %v962_v60, %v923_v5  ;;  %v2872_v5 = vmax.f32 %v2091_v0, 0.0 }
 0x1bd   : > { %v996_v53 = vsel %vm987_vm5, %v979_v31, 0.0  ;;  %914 = vrot.lane.b32.xlu1 %v2128_v13, %s1828_s29  ;;  %v651_v31 = vsel %vm617_vm2, %v612_v50, 0.0  ;;  %v577_v13 = vadd.f32 %v2003_v30, %v2199_v47 }
 0x1be   : > { %1012 = vst [vmem:[%s2356_s19 + $0x40] sm:$0xff] %v996_v53  ;;  %v604_v36 = vmul.f32 %v2045_v46, %v2872_v5  ;;  %v615_v53 = vmul.f32 %v2045_v46, %v2875_v25 }
 0x1bf   : > { %v2398_v2 = vpop.permute.xlu0 %928  ;;  %v2413_v60 = vpop.permute.xlu1 %1698 }
 0x1c0   : > { %756 = vrot.lane.b32.xlu0 %v719_v52, %s1827_s18 }
 0x1c1   : > { %930 = vrot.lane.b32.xlu1 %v2130_v14, %s1828_s29 }
 0x1c4   : > { %772 = vrot.lane.b32.xlu0 %v727_v18, %s1827_s18  ;;  %v2421_v18 = vpop.permute.xlu1 %910 }
 0x1c8   : > { %920 = vrot.lane.b32.xlu0 %v2256_v16, %s1828_s29  ;;  %v2407_v16 = vpop.permute.xlu0 %1703  ;;  %v927_v37 = vpop.permute.xlu1 %926 }
 0x1cc   : > { %936 = vrot.lane.b32.xlu0 %v2267_v3, %s1828_s29  ;;  %v2419_v52 = vpop.permute.xlu0 %1708 }
 0x1d0   : > { %1738 = vrot.lane.b32.xlu0 %v1737_v24, %s1829_s14  ;;  %v627_v24 = vsel %vm617_vm2, %v604_v36, 0.0  ;;  %v660_v36 = vsel %vm617_vm2, %v615_v53, 0.0  ;;  %v574_v53 = vadd.f32 %v2003_v30, %v2116_v9 }
 0x1e5   : > { %628 = vadd.xlane.f32.xlu1 %v627_v24 }
 0x1e9   : > { %652 = vadd.xlane.f32.xlu1 %v651_v31  ;;  %v566_v31 = vadd.f32 %v2003_v30, %v2114_v8 }
 0x1eb   : > { %v2432_v4 = vmax.f32 %v566_v31, 0.0 }
 0x1ee   : > { %v650_v5 = vpop.xlane.xlu0 %649 }
 0x1ef   : > { %vm676_vm7 = vcmp.gt.f32.partialorder %v650_v5, 0.0  ;;  %v692_v57 = vmul.f32 0.2, %v650_v5  ;;  %661 = vadd.xlane.f32.xlu0 %v660_v36  ;;  %v749_v36 = vpop.permute.xlu1 %748 }
 0x1f1   : > { %v708_v24 = vsel %vm676_vm7, %v650_v5, %v692_v57  ;;  %v568_v5 = vadd.f32 %v2003_v30, %v2169_v27 }
 0x1f2   : > { %v964_v50 = vsel %vm617_vm2, %v547_v6, %v708_v24  ;;  %v569_v6 = vadd.f32 %v2003_v30, %v2197_v45  ;;  %v576_v45 = vadd.f32 %v2003_v30, %v2171_v28  ;;  %v2466_v30 = vmax.f32 %v577_v13, 0.0 }
 0x1f3   : > { %v981_v23 = vsel %vm970_vm4, %v964_v50, %v927_v37  ;;  %v2442_v37 = vmax.f32 %v574_v53, 0.0  ;;  %v2460_v31 = vmax.f32 %v568_v5, 0.0 }
 0x1f4   : > { %v998_v25 = vsel %vm987_vm5, %v981_v23, 0.0  ;;  %v718_v23 = vmul.f32 %v2045_v46, %v2432_v4  ;;  %v2449_v57 = vmax.f32 %v569_v6, 0.0  ;;  %v2888_v6 = vmax.f32 %v2040_v43, 0.0 }
 0x1f5   : > { %1014 = vst [vmem:[%s2356_s19 + $0x50] sm:$0xff] %v998_v25  ;;  %v2887_v25 = vmax.f32 %v2036_v42, 0.0  ;;  %v726_v27 = vmul.f32 %v2045_v46, %v2442_v37  ;;  %v729_v13 = vmul.f32 %v2045_v46, %v2466_v30 }
 0x1f6   : > { %v1742_v28 = vpack.i.bf16 %v2449_v57, %v2460_v31  ;;  %v721_v43 = vmul.f32 %v2045_v46, %v2449_v57 }
 0x1fa   : > { %1723 = vrot.lane.b32.xlu1 %v2886_v55, %s1829_s14 }
 0x1fc   : > { %v623_v8 = vpop.xlane.xlu1 %622 }
 0x1fd   : > { %vm667_vm8 = vcmp.gt.f32.partialorder %v623_v8, 0.0  ;;  %v683_v9 = vmul.f32 0.2, %v623_v8 }
 0x1fe   : > { %754 = vrot.lane.b32.xlu1 %v718_v23, %s1827_s18  ;;  %v2474_v23 = vmax.f32 %v576_v45, 0.0  ;;  %v541_v45 = vmax.f32 %v2120_v10, 0.0 }
 0x1ff   : > { %v699_v21 = vsel %vm667_vm8, %v623_v8, %v683_v9  ;;  %vm2632_vm8 = vmor %vm1359_vm3, %vm1358_vm1 }
 0x200   : > { %v955_v24 = vsel %vm617_vm2, %v2887_v25, %v699_v21  ;;  %v647_v50 = vpop.xlane.xlu1 %646  ;;  %2889 = vst [vmem:[#allocation6_spill] sm:$0xff] %v2474_v23  ;;  %v1747_v9 = vpack.i.bf16 %v2466_v30, %v2474_v23 }
 0x201   : > { %v972_v53 = vsel %vm970_vm4, %v955_v24, %v2331_v32  ;;  %vm675_vm9 = vcmp.gt.f32.partialorder %v647_v50, 0.0  ;;  %v691_v47 = vmul.f32 0.2, %v647_v50  ;;  %v605_v24 = vmul.f32 %v2045_v46, %v541_v45 }
 0x202   : > { %v989_v55 = vsel %vm987_vm5, %v972_v53, 0.0  ;;  %770 = vrot.lane.b32.xlu1 %v726_v27, %s1827_s18 }
 0x203   : > { %1005 = vst [vmem:[%s2356_s19 + $0x8] sm:$0xff] %v989_v55  ;;  %v707_v42 = vsel %vm675_vm9, %v647_v50, %v691_v47  ;;  %v630_v50 = vsel %vm617_vm2, %v605_v24, 0.0  ;;  %v818_v55 = vsel %vm617_vm2, %v2359_v62, 0.0  ;;  %v1732_v62 = vpack.i.bf16 %v2374_v17, %v2442_v37 }
 0x204   : > { %v963_v8 = vsel %vm617_vm2, %v2888_v6, %v707_v42  ;;  %v751_v47 = vpop.permute.xlu1 %750 }
 0x205   : > { %v980_v32 = vsel %vm970_vm4, %v963_v8, %v2329_v15  ;;  %1743 = vrot.lane.b32.xlu0 %v1742_v28, %s1827_s18  ;;  %v2490_v15 = vpop.permute.xlu0 %1713  ;;  %v797_v28 = vsel %vm617_vm2, %v749_v36, 0.0  ;;  %v1727_v8 = vpack.i.bf16 %v2363_v44, %v2432_v4 }
 0x206   : > { %v997_v5 = vsel %vm987_vm5, %v980_v32, 0.0 }
 0x207   : > { %1013 = vst [vmem:[%s2356_s19 + $0x48] sm:$0xff] %v997_v5  ;;  %v800_v5 = vsel %vm617_vm2, %v751_v47, 0.0 }
 0x208   : > { %v767_v6 = vpop.permute.xlu1 %766 }
 0x209   : > { %1748 = vrot.lane.b32.xlu0 %v1747_v9, %s1827_s18  ;;  %v2492_v21 = vpop.permute.xlu0 %1718  ;;  %v824_v36 = vsel %vm617_vm2, %v767_v6, 0.0  ;;  %v2891_v6 = vmax.f32 %v2124_v11, 0.0 }
 0x20d   : > { %760 = vrot.lane.b32.xlu0 %v721_v43, %s1827_s18  ;;  %v2495_v25 = vpop.permute.xlu0 %752 }
 0x211   : > { %776 = vrot.lane.b32.xlu0 %v729_v13, %s1827_s18  ;;  %v2501_v27 = vpop.permute.xlu0 %768 }
 0x212   : > { %v827_v10 = vsel %vm617_vm2, %v2501_v27, 0.0  ;;  %v1700_v27 = vunpack.i.l.bf16 %v2413_v60 }
 0x215   : > { %v2503_v53 = vpop.permute.xlu0 %916 }
 0x219   : > { %v2507_v42 = vpop.permute.xlu0 %932 }
 0x226   : > { %631 = vadd.xlane.f32.xlu1 %v630_v50  ;;  %v2890_v50 = vmax.f32 %v2067_v56, 0.0 }
 0x230   : > { %819 = vadd.xlane.f32.xlu0 %v818_v55 }
 0x234   : > { %798 = vadd.xlane.f32.xlu0 %v797_v28 }
 0x237   : > { %1728 = vrot.lane.b32.xlu1 %v1727_v8, %s1827_s18  ;;  %v656_v32 = vpop.xlane.xlu0 %655 }
 0x238   : > { %801 = vadd.xlane.f32.xlu0 %v800_v5  ;;  %v694_v43 = vmul.f32 0.2, %v656_v32  ;;  %vm678_vm11 = vcmp.gt.f32.partialorder %v656_v32, 0.0 }
 0x239   : > { %v626_v9 = vpop.xlane.xlu1 %625 }
 0x23a   : > { %vm668_vm10 = vcmp.gt.f32.partialorder %v626_v9, 0.0  ;;  %v684_v13 = vmul.f32 0.2, %v626_v9  ;;  %v710_v28 = vsel %vm678_vm11, %v656_v32, %v694_v43  ;;  %v2880_v32 = vmax.f32 %v2151_v20, 0.0 }
 0x23b   : > { %1733 = vrot.lane.b32.xlu1 %v1732_v62, %s1827_s18 }
 0x23c   : > { %v700_v24 = vsel %vm668_vm10, %v626_v9, %v684_v13  ;;  %825 = vadd.xlane.f32.xlu0 %v824_v36  ;;  %v966_v9 = vsel %vm617_vm2, %v2891_v6, %v710_v28  ;;  %v614_v43 = vmul.f32 %v2045_v46, %v2880_v32  ;;  %v2892_v28 = vmax.f32 %v2091_v0, 0.0 }
 0x23d   : > { %v956_v47 = vsel %vm617_vm2, %v2890_v50, %v700_v24  ;;  %v2521_v55 = vpop.permute.xlu1 %914  ;;  %v720_v0 = vmul.f32 %v2045_v46, %v2460_v31 }
 0x23e   : > { %v973_v8 = vsel %vm970_vm4, %v956_v47, %v2421_v18  ;;  %v2881_v18 = vmax.f32 %v2147_v19, 0.0  ;;  %v657_v36 = vsel %vm617_vm2, %v614_v43, 0.0 }
 0x23f   : > { %v990_v5 = vsel %vm987_vm5, %v973_v8, 0.0  ;;  %918 = vrot.lane.b32.xlu1 %v2181_v34, %s1828_s29 }
 0x240   : > { %1006 = vst [vmem:[%s2356_s19 + $0x10] sm:$0xff] %v990_v5  ;;  %v606_v34 = vmul.f32 %v2045_v46, %v2881_v18 }
 0x241   : > { %v931_v62 = vpop.permute.xlu1 %930 }
 0x242   : > { %v983_v56 = vsel %vm970_vm4, %v966_v9, %v931_v62  ;;  %v633_v11 = vsel %vm617_vm2, %v606_v34, 0.0 }
 0x243   : > { %v1000_v13 = vsel %vm987_vm5, %v983_v56, 0.0  ;;  %934 = vrot.lane.b32.xlu1 %v2183_v35, %s1828_s29 }
 0x244   : > { %1016 = vst [vmem:[%s2356_s19 + $0x60] sm:$0xff] %v1000_v13  ;;  %v2893_v13 = vmax.f32 %v2095_v1, 0.0 }
 0x267   : > { %634 = vadd.xlane.f32.xlu1 %v633_v11 }
 0x26b   : > { %658 = vadd.xlane.f32.xlu1 %v657_v36 }
 0x272   : > { %v629_v24 = vpop.xlane.xlu1 %628 }
 0x273   : > { %vm669_vm12 = vcmp.gt.f32.partialorder %v629_v24, 0.0  ;;  %v685_v50 = vmul.f32 0.2, %v629_v24 }
 0x275   : > { %v701_v47 = vsel %vm669_vm12, %v629_v24, %v685_v50  ;;  %v728_v24 = vmul.f32 %v2045_v46, %v2474_v23 }
 0x276   : > { %v957_v8 = vsel %vm617_vm2, %v2892_v28, %v701_v47  ;;  %v653_v5 = vpop.xlane.xlu1 %652  ;;  %v757_v28 = vpop.permute.xlu0 %756 }
 0x277   : > { %v974_v62 = vsel %vm970_vm4, %v957_v8, %v2395_v59  ;;  %vm677_vm13 = vcmp.gt.f32.partialorder %v653_v5, 0.0  ;;  %v693_v6 = vmul.f32 0.2, %v653_v5 }
 0x278   : > { %v991_v9 = vsel %vm987_vm5, %v974_v62, 0.0  ;;  %v2879_v62 = vmax.f32 %v2175_v29, 0.0 }
 0x279   : > { %1007 = vst [vmem:[%s2356_s19 + $0x18] sm:$0xff] %v991_v9  ;;  %v709_v56 = vsel %vm677_vm13, %v653_v5, %v693_v6  ;;  %v2877_v9 = vmax.f32 %v2203_v48, 0.0 }
 0x27a   : > { %v965_v34 = vsel %vm617_vm2, %v2893_v13, %v709_v56  ;;  %v2557_v11 = vpop.permute.xlu1 %1723  ;;  %v607_v56 = vmul.f32 %v2045_v46, %v2879_v62 }
 0x27b   : > { %v982_v43 = vsel %vm970_vm4, %v965_v34, %v2398_v2  ;;  %v2571_v2 = vpop.permute.xlu0 %772  ;;  %v2878_v34 = vmax.f32 %v2207_v49, 0.0 }
 0x27c   : > { %v999_v59 = vsel %vm987_vm5, %v982_v43, 0.0  ;;  %758 = vrot.lane.b32.xlu1 %v720_v0, %s1827_s18  ;;  %v636_v0 = vsel %vm617_vm2, %v607_v56, 0.0  ;;  %v608_v43 = vmul.f32 %v2045_v46, %v2877_v9 }
 0x27d   : > { %1015 = vst [vmem:[%s2356_s19 + $0x58] sm:$0xff] %v999_v59 }
 0x27e   : > { %v755_v36 = vpop.permute.xlu1 %754 }
 0x27f   : > { %v806_v1 = vsel %vm617_vm2, %v755_v36, 0.0  ;;  %v2573_v8 = vpop.permute.xlu0 %920  ;;  %v639_v36 = vsel %vm617_vm2, %v608_v43, 0.0  ;;  %v821_v43 = vsel %vm617_vm2, %v2393_v54, 0.0 }
 0x280   : > { %774 = vrot.lane.b32.xlu1 %v728_v24, %s1827_s18  ;;  %807 = vadd.xlane.f32.xlu0 %v806_v1  ;;  %v616_v24 = vmul.f32 %v2045_v46, %v2878_v34 }
 0x282   : > { %v771_v50 = vpop.permute.xlu1 %770  ;;  %v663_v1 = vsel %vm617_vm2, %v616_v24, 0.0 }
 0x283   : > { %v830_v47 = vsel %vm617_vm2, %v771_v50, 0.0  ;;  %v2575_v5 = vpop.permute.xlu0 %936 }
 0x284   : > { %831 = vadd.xlane.f32.xlu0 %v830_v47  ;;  %v794_v47 = vsel %vm617_vm2, %v2337_v58, 0.0  ;;  %v803_v58 = vsel %vm617_vm2, %v2495_v25, 0.0  ;;  %v1690_v25 = vunpack.i.l.bf16 %v2349_v7 }
 0x287   : > { %v2578_v6 = vpop.permute.xlu0 %1738 }
 0x28b   : > { %v662_v13 = vpop.xlane.xlu0 %661 }
 0x28c   : > { %vm680_vm15 = vcmp.gt.f32.partialorder %v662_v13, 0.0 }
 0x28f   : > { %v2589_v59 = vpop.permute.xlu0 %1743 }
 0x293   : > { %v2596_v50 = vpop.permute.xlu0 %1748 }
 0x297   : > { %v761_v56 = vpop.permute.xlu0 %760 }
 0x2a4   : > { %637 = vadd.xlane.f32.xlu1 %v636_v0 }
 0x2a8   : > { %640 = vadd.xlane.f32.xlu1 %v639_v36 }
 0x2ac   : > { %664 = vadd.xlane.f32.xlu1 %v663_v1 }
 0x2b0   : > { %795 = vadd.xlane.f32.xlu1 %v794_v47  ;;  %v777_v47 = vpop.permute.xlu0 %776 }
 0x2b3   : > { %v632_v0 = vpop.xlane.xlu1 %631 }
 0x2b4   : > { %vm670_vm14 = vcmp.gt.f32.partialorder %v632_v0, 0.0  ;;  %v686_v9 = vmul.f32 0.2, %v632_v0  ;;  %822 = vadd.xlane.f32.xlu1 %v821_v43  ;;  %v809_v43 = vsel %vm617_vm2, %v757_v28, 0.0  ;;  %v1254_v28 = vsel %vm1245_vm6, %v1690_v25, 1.0 }
 0x2b5   : > { %v1696_v25 = vunpack.i.h.bf16 %v2401_v26 }
 0x2b6   : > { %v702_v46 = vsel %vm670_vm14, %v632_v0, %v686_v9  ;;  %v696_v9 = vmul.f32 0.2, %v662_v13 }
 0x2b7   : > { %v958_v36 = vsel %vm617_vm2, %v541_v45, %v702_v46  ;;  %v2605_v24 = vpop.permute.xlu1 %1728 }
 0x2b8   : > { %v975_v1 = vsel %vm970_vm4, %v958_v36, %v2521_v55  ;;  %804 = vadd.xlane.f32.xlu1 %v803_v58  ;;  %v712_v46 = vsel %vm680_vm15, %v662_v13, %v696_v9 }
 0x2b9   : > { %v992_v54 = vsel %vm987_vm5, %v975_v1, 0.0 }
 0x2ba   : > { %1008 = vst [vmem:[%s2356_s19 + $0x20] sm:$0xff] %v992_v54  ;;  %v1686_v54 = vunpack.i.h.bf16 %v2339_v51 }
 0x2bb   : > { %v2613_v34 = vpop.permute.xlu1 %1733 }
 0x2bc   : > { %828 = vadd.xlane.f32.xlu1 %v827_v10 }
 0x2bd   : > { %v820_v45 = vpop.xlane.xlu0 %819 }
 0x2be   : > { %vm850_vm0 = vcmp.gt.f32.partialorder %v820_v45, 0.0  ;;  %v866_v0 = vmul.f32 0.2, %v820_v45 }
 0x2bf   : > { %v2618_v55 = vpop.permute.xlu1 %918 }
 0x2c0   : > { %v882_v36 = vsel %vm850_vm0, %v820_v45, %v866_v0  ;;  %810 = vadd.xlane.f32.xlu1 %v809_v43  ;;  %v2896_v45 = vmax.f32 %v2179_v33, 0.0  ;;  %v833_v43 = vsel %vm617_vm2, %v2571_v2, 0.0  ;;  %v1247_v2 = vsel %vm1245_vm6, %v1686_v54, 1.0 }
 0x2c1   : > { %v1109_v58 = vmul.f32 %v882_v36, %v2087_v63  ;;  %v799_v1 = vpop.xlane.xlu0 %798 }
 0x2c2   : > { %vm843_vm7 = vcmp.gt.f32.partialorder %v799_v1, 0.0  ;;  %v859_v10 = vmul.f32 0.2, %v799_v1  ;;  %v968_v0 = vsel %vm617_vm2, %v2896_v45, %v712_v46  ;;  %v1705_v46 = vunpack.i.l.bf16 %v2407_v16 }
 0x2c3   : > { %v1237_v63 = vsel %vm617_vm2, %v1700_v27, %v1109_v58  ;;  %v935_v9 = vpop.permute.xlu1 %934 }
 0x2c4   : > { %v1616_v36 = vpack.c.bf16 %v1254_v28, %v1237_v63  ;;  %v875_v62 = vsel %vm843_vm7, %v799_v1, %v859_v10  ;;  %v985_v32 = vsel %vm970_vm4, %v968_v0, %v935_v9  ;;  %834 = vadd.xlane.f32.xlu1 %v833_v43  ;;  %v815_v1 = vsel %vm617_vm2, %v761_v56, 0.0 }
 0x2c5   : > { %v1102_v18 = vmul.f32 %v875_v62, %v2232_v38  ;;  %v1002_v23 = vsel %vm987_vm5, %v985_v32, 0.0  ;;  %v802_v27 = vpop.xlane.xlu0 %801  ;;  %v1715_v32 = vunpack.i.l.bf16 %v2490_v15  ;;  %v1248_v54 = vsel %vm1245_vm6, %v1705_v46, 1.0 }
 0x2c6   : > { %1369 = vst.msk [vmem:[%s2629_s26 + $0x40] sm:$0xff] %vm2632_vm8, %v1616_v36  ;;  %1018 = vst [vmem:[%s2356_s19 + $0x70] sm:$0xff] %v1002_v23  ;;  %vm844_vm9 = vcmp.gt.f32.partialorder %v802_v27, 0.0  ;;  %v860_v33 = vmul.f32 0.2, %v802_v27  ;;  %v839_v63 = vsel %vm617_vm2, %v777_v47, 0.0  ;;  %v2897_v47 = vpack.i.bf16 %v2155_v22, %v2130_v14 }
 0x2c7   : > { %v1230_v58 = vsel %vm617_vm2, %v1696_v25, %v1102_v18  ;;  %v1710_v18 = vunpack.i.l.bf16 %v2419_v52  ;;  %v2899_v22 = vmax.f32 %v2151_v20, 0.0 }
 0x2c8   : > { %v1609_v10 = vpack.c.bf16 %v1247_v2, %v1230_v58  ;;  %v876_v38 = vsel %vm844_vm9, %v802_v27, %v860_v33  ;;  %816 = vadd.xlane.f32.xlu1 %v815_v1  ;;  %v2898_v2 = vmax.f32 %v2147_v19, 0.0 }
 0x2c9   : > { %v1103_v62 = vmul.f32 %v876_v38, %v2295_v41  ;;  %v826_v28 = vpop.xlane.xlu0 %825  ;;  %v1720_v41 = vunpack.i.l.bf16 %v2492_v21  ;;  %v1256_v43 = vsel %vm1245_vm6, %v1710_v18, 1.0 }
 0x2ca   : > { %1362 = vst.msk [vmem:[%s2629_s26 + $0x8] sm:$0xff] %vm2632_vm8, %v1609_v10  ;;  %vm852_vm10 = vcmp.gt.f32.partialorder %v826_v28, 0.0  ;;  %v868_v23 = vmul.f32 0.2, %v826_v28 }
 0x2cb   : > { %v1231_v56 = vsel %vm617_vm2, %v1715_v32, %v1103_v62 }
 0x2cc   : > { %v1610_v9 = vpack.c.bf16 %v1248_v54, %v1231_v56  ;;  %v884_v45 = vsel %vm852_vm10, %v826_v28, %v868_v23  ;;  %840 = vadd.xlane.f32.xlu1 %v839_v63  ;;  %v1725_v56 = vunpack.i.l.bf16 %v2557_v11 }
 0x2cd   : > { %v1111_v0 = vmul.f32 %v884_v45, %v2302_v61 }
 0x2ce   : > { %1363 = vst.msk [vmem:[%s2629_s26 + $0x10] sm:$0xff] %vm2632_vm8, %v1610_v9  ;;  %v1730_v9 = vunpack.i.l.bf16 %v2605_v24  ;;  %v1250_v45 = vsel %vm1245_vm6, %v1725_v56, 1.0 }
 0x2cf   : > { %v1239_v36 = vsel %vm617_vm2, %v1720_v41, %v1111_v0 }
 0x2d0   : > { %v1618_v25 = vpack.c.bf16 %v1256_v43, %v1239_v36  ;;  %v2900_v43 = vpack.i.bf16 %v2267_v3, %v2183_v35 }
 0x2d2   : > { %1371 = vst.msk [vmem:[%s2629_s26 + $0x50] sm:$0xff] %vm2632_vm8, %v1618_v25 }
 0x2dd   : > { %1753 = vrot.lane.b32.xlu1 %v2897_v47, %s1829_s14  ;;  %v2901_v47 = vmax.f32 %v2175_v29, 0.0 }
 0x2f4   : > { %v635_v27 = vpop.xlane.xlu1 %634 }
 0x2f5   : > { %vm671_vm11 = vcmp.gt.f32.partialorder %v635_v27, 0.0  ;;  %v687_v61 = vmul.f32 0.2, %v635_v27 }
 0x2f7   : > { %v703_v33 = vsel %vm671_vm11, %v635_v27, %v687_v61 }
 0x2f8   : > { %v959_v46 = vsel %vm617_vm2, %v2898_v2, %v703_v33  ;;  %v659_v58 = vpop.xlane.xlu1 %658 }
 0x2f9   : > { %v976_v1 = vsel %vm970_vm4, %v959_v46, %v2503_v53  ;;  %vm679_vm12 = vcmp.gt.f32.partialorder %v659_v58, 0.0  ;;  %v695_v10 = vmul.f32 0.2, %v659_v58  ;;  %v2902_v46 = vmax.f32 %v2203_v48, 0.0 }
 0x2fa   : > { %v993_v38 = vsel %vm987_vm5, %v976_v1, 0.0 }
 0x2fb   : > { %1009 = vst [vmem:[%s2356_s19 + $0x28] sm:$0xff] %v993_v38  ;;  %v711_v14 = vsel %vm679_vm12, %v659_v58, %v695_v10 }
 0x2fc   : > { %v967_v32 = vsel %vm617_vm2, %v2899_v22, %v711_v14  ;;  %v759_v62 = vpop.permute.xlu1 %758  ;;  %v2903_v14 = vmax.f32 %v2207_v49, 0.0  ;;  %v1685_v49 = vunpack.i.l.bf16 %v2339_v51 }
 0x2fd   : > { %v984_v19 = vsel %vm970_vm4, %v967_v32, %v2507_v42  ;;  %v812_v28 = vsel %vm617_vm2, %v759_v62, 0.0 }
 0x2fe   : > { %v1001_v23 = vsel %vm987_vm5, %v984_v19, 0.0  ;;  %813 = vadd.xlane.f32.xlu0 %v812_v28  ;;  %v1695_v28 = vunpack.i.l.bf16 %v2401_v26 }
 0x2ff   : > { %1017 = vst [vmem:[%s2356_s19 + $0x68] sm:$0xff] %v1001_v23 }
 0x300   : > { %v775_v53 = vpop.permute.xlu1 %774 }
 0x301   : > { %v836_v54 = vsel %vm617_vm2, %v775_v53, 0.0 }
 0x302   : > { %837 = vadd.xlane.f32.xlu0 %v836_v54 }
 0x30d   : > { %v808_v18 = vpop.xlane.xlu0 %807 }
 0x30e   : > { %vm846_vm13 = vcmp.gt.f32.partialorder %v808_v18, 0.0  ;;  %v862_v20 = vmul.f32 0.2, %v808_v18 }
 0x310   : > { %v878_v63 = vsel %vm846_vm13, %v808_v18, %v862_v20 }
 0x311   : > { %v1105_v42 = vmul.f32 %v878_v63, %v2432_v4 }
 0x313   : > { %v1233_v41 = vsel %vm617_vm2, %v1730_v9, %v1105_v42 }
 0x314   : > { %v1612_v0 = vpack.c.bf16 %v1250_v45, %v1233_v41 }
 0x316   : > { %1365 = vst.msk [vmem:[%s2629_s26 + $0x20] sm:$0xff] %vm2632_vm8, %v1612_v0 }
 0x318   : > { %1758 = vrot.lane.b32.xlu0 %v2900_v43, %s1829_s14  ;;  %s1768_s14 = scalar_lea.vmem %s1767_s12, 4096 }
 0x319   : > { %p1770_p1 = scmp.lt.s32.totalorder %s1768_s14, %s1762_s10 }
 0x31b   : > { %p1771_p2 = por %p1770_p1, %p1769_p0 }
 0x31d   : > { %p1772_p3 = pnand %p1771_p2, %p1765_p13 }
 0x331   : > { %v638_v36 = vpop.xlane.xlu1 %637 }
 0x332   : > { %vm672_vm14 = vcmp.gt.f32.partialorder %v638_v36, 0.0  ;;  %v688_v25 = vmul.f32 0.2, %v638_v36 }
 0x334   : > { %v704_v4 = vsel %vm672_vm14, %v638_v36, %v688_v25 }
 0x335   : > { %v960_v27 = vsel %vm617_vm2, %v2901_v47, %v704_v4  ;;  %v641_v61 = vpop.xlane.xlu1 %640 }
 0x336   : > { %v977_v33 = vsel %vm970_vm4, %v960_v27, %v2618_v55  ;;  %vm673_vm15 = vcmp.gt.f32.partialorder %v641_v61, 0.0  ;;  %v689_v2 = vmul.f32 0.2, %v641_v61 }
 0x337   : > { %v994_v35 = vsel %vm987_vm5, %v977_v33, 0.0 }
 0x338   : > { %1010 = vst [vmem:[%s2356_s19 + $0x30] sm:$0xff] %v994_v35  ;;  %v705_v3 = vsel %vm673_vm15, %v641_v61, %v689_v2 }
 0x339   : > { %v961_v58 = vsel %vm617_vm2, %v2902_v46, %v705_v3  ;;  %v665_v1 = vpop.xlane.xlu1 %664 }
 0x33a   : > { %v978_v29 = vsel %vm970_vm4, %v961_v58, %v2573_v8  ;;  %vm681_vm0 = vcmp.gt.f32.partialorder %v665_v1, 0.0  ;;  %v697_v10 = vmul.f32 0.2, %v665_v1 }
 0x33b   : > { %v995_v55 = vsel %vm987_vm5, %v978_v29, 0.0 }
 0x33c   : > { %1011 = vst [vmem:[%s2356_s19 + $0x38] sm:$0xff] %v995_v55  ;;  %v713_v38 = vsel %vm681_vm0, %v665_v1, %v697_v10 }
 0x33d   : > { %v969_v48 = vsel %vm617_vm2, %v2903_v14, %v713_v38  ;;  %v796_v22 = vpop.xlane.xlu1 %795 }
 0x33e   : > { %v986_v8 = vsel %vm970_vm4, %v969_v48, %v2575_v5  ;;  %vm842_vm1 = vcmp.gt.f32.partialorder %v796_v22, 0.0  ;;  %v858_v32 = vmul.f32 0.2, %v796_v22 }
 0x33f   : > { %v1003_v62 = vsel %vm987_vm5, %v986_v8, 0.0 }
 0x340   : > { %1019 = vst [vmem:[%s2356_s19 + $0x78] sm:$0xff] %v1003_v62  ;;  %v874_v19 = vsel %vm842_vm1, %v796_v22, %v858_v32 }
 0x341   : > { %v1101_v23 = vmul.f32 %v874_v19, %v2024_v39  ;;  %v823_v53 = vpop.xlane.xlu1 %822 }
 0x342   : > { %1775 = shalt.err (!%p1772_p3)
}
 0x343   : > { %s1776_s16 = scalar_lea.hbm %s2727_s9, 2048  ;;  %s1780_s18 = scalar_lea.hbm %s2866_s4, 4096 }
 0x344   : > { %p1777_p4 = scmp.ne.s32.totalorder %s2727_s9, %s1776_s16  ;;  %p1781_p9 = scmp.lt.u32.totalorder %s2727_s9, %s2866_s4 }
 0x345   : > { %p1782_p10 = scmp.lt.u32.totalorder %s1780_s18, %s1776_s16  ;;  %p1784_p12 = scmp.lt.u32.totalorder %s1776_s16, %s2727_s9 }
 0x346   : > { %p1778_p7 = pnand %p1777_p4, %p1906_p5 }
 0x347   : > { %p1783_p11 = por %p1782_p10, %p1781_p9 }
 0x348   : > { %p1779_p8 = pneg %p1778_p7 }
 0x349   : > { %p1785_p13 = por %p1784_p12, %p1783_p11 }
 0x34b   : > { %p1786_p0 = pnand %p1785_p13, %p1779_p8 }
 0x34d   : > { %1789 = shalt.err (!%p1786_p0)
}
 0x34e   : > { %s1831_s28 = smov 128   ;;  %s1832_s29 = smov 8   ;;  %vm851_vm4 = vcmp.gt.f32.partialorder %v823_v53, 0.0  ;;  %v867_v39 = vmul.f32 0.2, %v823_v53  ;;  %v1246_v51 = vsel %vm1245_vm6, %v1685_v49, 1.0  ;;  %v1691_v26 = vunpack.i.h.bf16 %v2349_v7  ;;  %v805_v63 = vpop.xlane.xlu1 %804  ;;  %v832_v10 = vpop.xlane.xlu0 %831 }
 0x34f   : > { %1637 = dma.vmem_to_hbm [thread:$0]  (%p1906_p5), %s2729_s13, 2048, %s2727_s9, %s2740_s25, %s1831_s28, %s1831_s28, %s1832_s29   ;;  %v1229_v5 = vsel %vm617_vm2, %v1695_v28, %v1101_v23  ;;  %v1701_v20 = vunpack.i.h.bf16 %v2413_v60  ;;  %vm845_vm5 = vcmp.gt.f32.partialorder %v805_v63, 0.0  ;;  %v861_v9 = vmul.f32 0.2, %v805_v63 }
 0x350   : > { %v1608_v54 = vpack.c.bf16 %v1246_v51, %v1229_v5  ;;  %v883_v18 = vsel %vm851_vm4, %v823_v53, %v867_v39  ;;  %v1255_v42 = vsel %vm1245_vm6, %v1691_v26, 1.0  ;;  %v1706_v45 = vunpack.i.h.bf16 %v2407_v16 }
 0x351   : > { %v1110_v56 = vmul.f32 %v883_v18, %v2225_v12  ;;  %v877_v0 = vsel %vm845_vm5, %v805_v63, %v861_v9  ;;  %v1716_v43 = vunpack.i.h.bf16 %v2490_v15  ;;  %v1711_v4 = vunpack.i.h.bf16 %v2419_v52  ;;  %v2904_v15 = vld [vmem:[#allocation5_spill] sm:$0xff] }
 0x352   : > { %1361 = vst.msk [vmem:[%s2629_s26] sm:$0xff] %vm2632_vm8, %v1608_v54  ;;  %v1104_v60 = vmul.f32 %v877_v0, %v2297_v40  ;;  %v829_v12 = vpop.xlane.xlu1 %828  ;;  %v1249_v25 = vsel %vm1245_vm6, %v1706_v45, 1.0  ;;  %v1721_v61 = vunpack.i.h.bf16 %v2492_v21  ;;  %v1726_v3 = vunpack.i.h.bf16 %v2557_v11 }
 0x353   : > { %v1238_v7 = vsel %vm617_vm2, %v1701_v20, %v1110_v56  ;;  %vm853_vm3 = vcmp.gt.f32.partialorder %v829_v12, 0.0  ;;  %v869_v36 = vmul.f32 0.2, %v829_v12  ;;  %v1257_v35 = vsel %vm1245_vm6, %v1711_v4, 1.0 }
 0x354   : > { %v1617_v41 = vpack.c.bf16 %v1255_v42, %v1238_v7  ;;  %v1232_v16 = vsel %vm617_vm2, %v1716_v43, %v1104_v60  ;;  %v1731_v1 = vunpack.i.h.bf16 %v2605_v24  ;;  %v1251_v55 = vsel %vm1245_vm6, %v1726_v3, 1.0 }
 0x355   : > { %v1611_v47 = vpack.c.bf16 %v1249_v25, %v1232_v16  ;;  %v885_v27 = vsel %vm853_vm3, %v829_v12, %v869_v36  ;;  %v870_v11 = vmul.f32 0.2, %v832_v10  ;;  %vm854_vm9 = vcmp.gt.f32.partialorder %v832_v10, 0.0 }
 0x356   : > { %1370 = vst.msk [vmem:[%s2629_s26 + $0x48] sm:$0xff] %vm2632_vm8, %v1617_v41  ;;  %v1112_v33 = vmul.f32 %v885_v27, %v2904_v15  ;;  %v811_v40 = vpop.xlane.xlu1 %810  ;;  %v1741_v24 = vunpack.i.h.bf16 %v2578_v6  ;;  %v1746_v32 = vunpack.i.h.bf16 %v2589_v59  ;;  %v1736_v54 = vunpack.i.h.bf16 %v2613_v34  ;;  %v2905_v15 = vld [vmem:[#allocation6_spill] sm:$0xff] }
 0x357   : > { %1364 = vst.msk [vmem:[%s2629_s26 + $0x18] sm:$0xff] %vm2632_vm8, %v1611_v47  ;;  %vm847_vm7 = vcmp.gt.f32.partialorder %v811_v40, 0.0  ;;  %v863_v2 = vmul.f32 0.2, %v811_v40  ;;  %v886_v49 = vsel %vm854_vm9, %v832_v10, %v870_v11  ;;  %v1735_v18 = vunpack.i.l.bf16 %v2613_v34 }
 0x358   : > { %v1240_v52 = vsel %vm617_vm2, %v1721_v61, %v1112_v33  ;;  %v1253_v23 = vsel %vm1245_vm6, %v1741_v24, 1.0  ;;  %v1113_v39 = vmul.f32 %v886_v49, %v2442_v37  ;;  %v1740_v41 = vunpack.i.l.bf16 %v2578_v6 }
 0x359   : > { %v1619_v46 = vpack.c.bf16 %v1257_v35, %v1240_v52  ;;  %v879_v58 = vsel %vm847_vm7, %v811_v40, %v863_v2  ;;  %v1745_v43 = vunpack.i.l.bf16 %v2589_v59  ;;  %v1750_v61 = vunpack.i.l.bf16 %v2596_v50 }
 0x35a   : > { %v1106_v21 = vmul.f32 %v879_v58, %v2363_v44  ;;  %v835_v29 = vpop.xlane.xlu1 %834  ;;  %v1241_v37 = vsel %vm617_vm2, %v1735_v18, %v1113_v39  ;;  %v1252_v4 = vsel %vm1245_vm6, %v1740_v41, 1.0 }
 0x35b   : > { %1372 = vst.msk [vmem:[%s2629_s26 + $0x58] sm:$0xff] %vm2632_vm8, %v1619_v46  ;;  %v871_v48 = vmul.f32 0.2, %v835_v29  ;;  %vm855_vm10 = vcmp.gt.f32.partialorder %v835_v29, 0.0 }
 0x35c   : > { %v1234_v38 = vsel %vm617_vm2, %v1731_v1, %v1106_v21 }
 0x35d   : > { %v1613_v14 = vpack.c.bf16 %v1251_v55, %v1234_v38  ;;  %v887_v62 = vsel %vm855_vm10, %v835_v29, %v871_v48 }
 0x35e   : > { %v817_v22 = vpop.xlane.xlu1 %816  ;;  %v1114_v51 = vmul.f32 %v887_v62, %v2374_v17 }
 0x35f   : > { %1366 = vst.msk [vmem:[%s2629_s26 + $0x28] sm:$0xff] %vm2632_vm8, %v1613_v14  ;;  %vm849_vm11 = vcmp.gt.f32.partialorder %v817_v22, 0.0  ;;  %v865_v44 = vmul.f32 0.2, %v817_v22 }
 0x360   : > { %v1242_v56 = vsel %vm617_vm2, %v1736_v54, %v1114_v51 }
 0x361   : > { %v881_v8 = vsel %vm849_vm11, %v817_v22, %v865_v44 }
 0x362   : > { %v1108_v19 = vmul.f32 %v881_v8, %v2449_v57  ;;  %v841_v28 = vpop.xlane.xlu1 %840 }
 0x363   : > { %v873_v34 = vmul.f32 0.2, %v841_v28  ;;  %vm857_vm12 = vcmp.gt.f32.partialorder %v841_v28, 0.0 }
 0x364   : > { %v1236_v53 = vsel %vm617_vm2, %v1746_v32, %v1108_v19 }
 0x365   : > { %v1615_v26 = vpack.c.bf16 %v1253_v23, %v1236_v53  ;;  %v889_v60 = vsel %vm857_vm12, %v841_v28, %v873_v34 }
 0x366   : > { %v1754_v5 = vpop.permute.xlu1 %1753  ;;  %v1116_v47 = vmul.f32 %v889_v60, %v2466_v30 }
 0x367   : > { %1368 = vst.msk [vmem:[%s2629_s26 + $0x38] sm:$0xff] %vm2632_vm8, %v1615_v26  ;;  %v1756_v57 = vunpack.i.h.bf16 %v1754_v5  ;;  %v1755_v20 = vunpack.i.l.bf16 %v1754_v5 }
 0x369   : > { %v1259_v63 = vsel %vm1245_vm6, %v1756_v57, 1.0  ;;  %v1258_v9 = vsel %vm1245_vm6, %v1755_v20, 1.0 }
 0x36a   : > { %v1621_v17 = vpack.c.bf16 %v1259_v63, %v1242_v56  ;;  %v1620_v42 = vpack.c.bf16 %v1258_v9, %v1241_v37 }
 0x36c   : > { %1374 = vst.msk [vmem:[%s2629_s26 + $0x68] sm:$0xff] %vm2632_vm8, %v1621_v17  ;;  %1373 = vst.msk [vmem:[%s2629_s26 + $0x60] sm:$0xff] %vm2632_vm8, %v1620_v42 }
 0x38b   : > { %v814_v45 = vpop.xlane.xlu0 %813 }
 0x38c   : > { %vm848_vm13 = vcmp.gt.f32.partialorder %v814_v45, 0.0  ;;  %v864_v7 = vmul.f32 0.2, %v814_v45 }
 0x38e   : > { %v880_v0 = vsel %vm848_vm13, %v814_v45, %v864_v7 }
 0x38f   : > { %v1107_v12 = vmul.f32 %v880_v0, %v2460_v31  ;;  %v838_v36 = vpop.xlane.xlu0 %837  ;;  %v1751_v31 = vunpack.i.h.bf16 %v2596_v50 }
 0x390   : > { %vm856_vm14 = vcmp.gt.f32.partialorder %v838_v36, 0.0  ;;  %v872_v25 = vmul.f32 0.2, %v838_v36 }
 0x391   : > { %v1235_v16 = vsel %vm617_vm2, %v1745_v43, %v1107_v12  ;;  %v1244_v3 = vsel %vm617_vm2, %v1751_v31, %v1116_v47 }
 0x392   : > { %v1614_v27 = vpack.c.bf16 %v1252_v4, %v1235_v16  ;;  %v888_v6 = vsel %vm856_vm14, %v838_v36, %v872_v25 }
 0x393   : > { %v1115_v59 = vmul.f32 %v888_v6, %v2905_v15  ;;  %v1759_v33 = vpop.permute.xlu0 %1758 }
 0x394   : > { %1367 = vst.msk [vmem:[%s2629_s26 + $0x30] sm:$0xff] %vm2632_vm8, %v1614_v27  ;;  %v1761_v40 = vunpack.i.h.bf16 %v1759_v33  ;;  %v1760_v2 = vunpack.i.l.bf16 %v1759_v33 }
 0x395   : > { %v1243_v35 = vsel %vm617_vm2, %v1750_v61, %v1115_v59 }
 0x396   : > { %v1261_v30 = vsel %vm1245_vm6, %v1761_v40, 1.0  ;;  %v1260_v52 = vsel %vm1245_vm6, %v1760_v2, 1.0 }
 0x397   : > { %v1622_v46 = vpack.c.bf16 %v1260_v52, %v1243_v35  ;;  %v1623_v58 = vpack.c.bf16 %v1261_v30, %v1244_v3 }
 0x399   : > { %1375 = vst.msk [vmem:[%s2629_s26 + $0x70] sm:$0xff] %vm2632_vm8, %v1622_v46  ;;  %1376 = vst.msk [vmem:[%s2629_s26 + $0x78] sm:$0xff] %vm2632_vm8, %v1623_v58 }
 0x39a PF: > { %p1643_p5 = scmp.ge.s32.totalorder %s1824_s24, 2  ;;  %s1425_s7 = sand.u32 1, %s1812_s21  }
 0x39b   : > { %s1426_s13 = scalar_lea.sflag [#allocation3], %s1425_s7 }
 0x39c   : > { %p1640_p1 = pnand %p1643_p5, %p1910_p6 }
 0x39e   : > { %1807 = dma.done.wait (!%p1640_p1), %s1426_s13, 2048  }
 0x39f   : > { %1809 = vsyncadd (!%p1640_p1), %s1426_s13, 4294965248  ;;  %p17_p2 = scmp.ge.s32.totalorder %s1893_s27, 4   ;;  %s2906_s21 = smov %s1816_s22 }
 0x3a0   : > { %s2907_s22 = smov %s1820_s23  ;;  %s2908_s23 = smov %s1904_s30 }
 0x3a1   : > { %s2909_s24 = smov %s1893_s27  ;;  %19 = sbr.rel (!%p17_p2) target bundleno = 3 (0x3), region = 95 }
 0x3a8   :  { %1448 = vsyncpa [#allocation3], 1 }
 0x3a9   :  { %1450 = vsyncpa [#allocation3 + $0x1], 1 }

</bundles_post_ra>
